<compile_context>
chip_gen: v6e
topology: v6e:2x2x1
jax: 0.10.0
libtpu: 0.0.40
codegen_flags: <defaults>
</compile_context>

<pallas_src>
import jax
import jax.numpy as jnp
from jax.experimental import pallas as pl
from jax.experimental.pallas import tpu as pltpu

D_IN = 3        # node_input_dim
H_NODE = 8      # node_hidden_dim
H_EDGE = 8      # edge_hidden_dim
N_ITER = 3      # n_iter
F_COMB = D_IN + H_NODE      # 11
LN_EPS = 1e-5

# packed parameter slab layout
_W_ROWS, _W_COLS = 80, 16   # weight slab  [80, 16]  (transposed [out, in] blocks)
_VEC_ORDER = ("bi1", "gi1", "zi1", "bi2", "gi2", "zi2", "bi3", "gi3", "zi3",
              "be1", "ge1", "ze1", "bn1", "gn1", "zn1", "bn2", "gn2", "zn2",
              "be2")
_V_ROWS = 8 * len(_VEC_ORDER)   # vector slab [152, 1]


def _segment_classifier_kernel(x_ref, srcc_ref, dstc_ref, srcr_ref, dstr_ref,
                               w_ref, v_ref, out_ref,
                               h_scr, hx_scr, min_scr, mout_scr):
    f32, bf16 = jnp.float32, jnp.bfloat16
    it = pl.program_id(0)                 # message-passing iteration (last = final edge net)
    ei = pl.program_id(1)                 # edge tile
    n_iter = pl.num_programs(0) - 1
    n_etiles = pl.num_programs(1)
    te = srcc_ref.shape[0]
    npad = x_ref.shape[1]

    def mm(a, b):
        return jnp.dot(a, b, preferred_element_type=f32)

    def ln(v, g, b):
        # LayerNorm over the feature axis (axis 0: features live on sublanes)
        m = jnp.mean(v, axis=0, keepdims=True)
        c = v - m
        var = jnp.mean(c * c, axis=0, keepdims=True)
        return c * jax.lax.rsqrt(var + LN_EPS) * g + b

    # ---- unpack the two parameter slabs (static, 8-aligned slices) ----
    W = w_ref[...]                        # [80, 16]
    V = v_ref[...]                        # [152, 1]

    def vcol(j):
        return V[8 * j:8 * j + 8, :]      # [8, 1]

    wi1 = W[0:8, 0:8]
    wi2 = W[8:16, 0:8]
    wi3 = W[16:24, 0:8]
    we1_b = W[24:32, :]                   # [8, 16] (cols 11:16 zero)
    we1_e = W[32:40, :]
    we2 = W[40:41, 0:8]                   # [1, 8]
    wn1_i = W[48:56, :]
    wn1_o = W[56:64, :]
    wn1_c = W[64:72, :]
    wn2 = W[72:80, 0:8]

    bi1, gi1, zi1 = vcol(0), vcol(1), vcol(2)
    bi2, gi2, zi2 = vcol(3), vcol(4), vcol(5)
    bi3, gi3, zi3 = vcol(6), vcol(7), vcol(8)
    be1, ge1, ze1 = vcol(9), vcol(10), vcol(11)
    bn1, gn1, zn1 = vcol(12), vcol(13), vcol(14)
    bn2, gn2, zn2 = vcol(15), vcol(16), vcol(17)
    be2 = V[8 * 18:8 * 18 + 1, :]         # [1, 1]

    x_t = x_ref[...]                      # [8, Npad] (rows D_IN:8 are zero)

    # ---- phase 0: node input network (once, on the very first grid step) ----
    @pl.when(jnp.logical_and(it == 0, ei == 0))
    def _init():
        h = jnp.tanh(ln(mm(wi1, x_t) + bi1, gi1, zi1))
        h = jnp.tanh(ln(mm(wi2, h) + bi2, gi2, zi2))
        h = jnp.tanh(ln(mm(wi3, h) + bi3, gi3, zi3))
        h_scr[...] = h
        hx_scr[0:8, :] = 2.0 * h          # combined = concat([2*h, x])
        hx_scr[8:16, :] = x_t

    # zero the scatter accumulators at the start of every edge sweep
    @pl.when(ei == 0)
    def _zero():
        min_scr[...] = jnp.zeros_like(min_scr)
        mout_scr[...] = jnp.zeros_like(mout_scr)

    # ---- per-edge-tile work: on-chip incidence, gather, edge network ----
    hx = hx_scr[...]                      # [16, Npad] f32
    hx_bf = hx.astype(bf16)

    src_c = srcc_ref[...]                 # [te, 1] int32
    dst_c = dstc_ref[...]
    src_r = srcr_ref[...]                 # [1, te] int32
    dst_r = dstr_ref[...]

    nid_en = jax.lax.broadcasted_iota(jnp.int32, (te, npad), 1)
    nid_ne = jax.lax.broadcasted_iota(jnp.int32, (npad, te), 0)

    # one-hot incidence tiles, built on-chip, bf16 (0/1 exact)
    aint_t = (src_c == nid_en).astype(bf16)     # [te, Npad]: 1 iff edge start == n
    aoutt_t = (dst_c == nid_en).astype(bf16)    # [te, Npad]: 1 iff edge end   == n
    ain_t = (src_r == nid_ne).astype(bf16)      # [Npad, te]
    aout_t = (dst_r == nid_ne).astype(bf16)

    bsel = mm(hx_bf, ain_t)               # [16, te] start-node combined features
    esel = mm(hx_bf, aout_t)              # [16, te] end-node combined features

    z = mm(we1_b, bsel) + mm(we1_e, esel) + be1   # [8, te]
    z = jnp.tanh(ln(z, ge1, ze1))
    w_row = jax.nn.sigmoid(mm(we2, z) + be2)      # [1, te] lane-dense scores

    out_ref[...] = w_row                  # last iteration's write is what lands

    # ---- scatter + node network (skipped on the final edge-net-only pass) ----
    @pl.when(it < n_iter)
    def _scatter():
        min_scr[...] += mm((w_row * esel).astype(bf16), aint_t)    # [16, Npad]
        mout_scr[...] += mm((w_row * bsel).astype(bf16), aoutt_t)

    @pl.when(jnp.logical_and(it < n_iter, ei == n_etiles - 1))
    def _node_update():
        z2 = (mm(wn1_i, min_scr[...]) + mm(wn1_o, mout_scr[...]) +
              mm(wn1_c, hx) + bn1)        # [8, Npad]
        z2 = jnp.tanh(ln(z2, gn1, zn1))
        h_new = jnp.tanh(ln(mm(wn2, z2) + bn2, gn2, zn2))
        hx_scr[0:8, :] = h_scr[...] + h_new       # residual: h_prev + h_new
        h_scr[...] = h_new


def _pack_params(p):
    """Pack all parameters into one weight slab [80,16] and one vector slab [152,1]."""
    F = F_COMB
    w = jnp.zeros((_W_ROWS, _W_COLS), jnp.float32)

    def put(w, row, mat):                 # mat stored [in, out] -> place mat.T
        mt = mat.T
        return w.at[row:row + mt.shape[0], 0:mt.shape[1]].set(mt)

    w = put(w, 0, p["wi1"])
    w = put(w, 8, p["wi2"])
    w = put(w, 16, p["wi3"])
    w = put(w, 24, p["we1"][0:F])
    w = put(w, 32, p["we1"][F:2 * F])
    w = put(w, 40, p["we2"])
    w = put(w, 48, p["wn1"][0:F])
    w = put(w, 56, p["wn1"][F:2 * F])
    w = put(w, 64, p["wn1"][2 * F:3 * F])
    w = put(w, 72, p["wn2"])

    v = jnp.zeros((_V_ROWS, 1), jnp.float32)
    for j, name in enumerate(_VEC_ORDER):
        vec = p[name]
        v = v.at[8 * j:8 * j + vec.shape[0], 0].set(vec)
    return w, v


def _vmem_limit_bytes(npad, te):
    incidence = 4 * te * npad * 2                    # four bf16 one-hot tiles
    node_state = (8 + 3 * 16) * npad * 4             # x_T + h / hx / m_in / m_out
    edge_work = 8 * te * 4 * 64                      # per-tile activations + margin
    est = 4 * (incidence + node_state + edge_work) + (2 << 20)
    return int(min(max(est, 16 * 1024 * 1024), 64 * 1024 * 1024))


def segment_classifier_forward(nodes, edges, params, *, edge_tile=128):
    """nodes: [1, N, D_in] float32, edges: [1, E, 2] int -> edge scores [1, E]."""
    if nodes.shape[0] != 1 or edges.shape[0] != 1:
        raise ValueError("Only batch_size=1 is supported (variable-size graph).")
    n, d = nodes.shape[1], nodes.shape[2]
    e = edges.shape[1]
    assert d == D_IN

    npad = ((max(n, 1) + 127) // 128) * 128          # lane-dense node axis
    te = edge_tile
    epad = ((max(e, 1) + te - 1) // te) * te
    n_etiles = epad // te

    # transposed node features [8, Npad]; rows D_IN:8 zero-padded
    x_t = jnp.zeros((8, npad), jnp.float32)
    x_t = x_t.at[0:d, 0:n].set(nodes[0].astype(jnp.float32).T)

    # endpoint indices; padded edges get -1 (match no node -> contribute nothing)
    src = edges[0, :, 0].astype(jnp.int32)
    dst = edges[0, :, 1].astype(jnp.int32)
    pad = jnp.full((epad - e,), -1, jnp.int32)
    src = jnp.concatenate([src, pad])
    dst = jnp.concatenate([dst, pad])
    src_col, dst_col = src[:, None], dst[:, None]    # [Epad, 1]
    src_row, dst_row = src[None, :], dst[None, :]    # [1, Epad]

    w_slab, v_slab = _pack_params(params)

    out = pl.pallas_call(
        _segment_classifier_kernel,
        out_shape=jax.ShapeDtypeStruct((1, epad), jnp.float32),
        grid=(N_ITER + 1, n_etiles),
        in_specs=[
            pl.BlockSpec((8, npad), lambda it, ei: (0, 0)),          # x_T (resident)
            pl.BlockSpec((te, 1), lambda it, ei: (ei, 0)),           # src column
            pl.BlockSpec((te, 1), lambda it, ei: (ei, 0)),           # dst column
            pl.BlockSpec((1, te), lambda it, ei: (0, ei)),           # src row
            pl.BlockSpec((1, te), lambda it, ei: (0, ei)),           # dst row
            pl.BlockSpec((_W_ROWS, _W_COLS), lambda it, ei: (0, 0)),  # weight slab
            pl.BlockSpec((_V_ROWS, 1), lambda it, ei: (0, 0)),        # bias/LN slab
        ],
        out_specs=pl.BlockSpec((1, te), lambda it, ei: (0, ei)),
        scratch_shapes=[
            pltpu.VMEM((8, npad), jnp.float32),      # h (node hidden features)
            pltpu.VMEM((16, npad), jnp.float32),     # hx = concat([h-part, x])
            pltpu.VMEM((16, npad), jnp.float32),     # m_in scatter accumulator
            pltpu.VMEM((16, npad), jnp.float32),     # m_out scatter accumulator
        ],
        compiler_params=pltpu.CompilerParams(
            # both axes carry sequential deps (recurrence + scatter reduction)
            dimension_semantics=("arbitrary", "arbitrary"),
            vmem_limit_bytes=_vmem_limit_bytes(npad, te),
        ),
    )(x_t, src_col, dst_col, src_row, dst_row, w_slab, v_slab)

    return out[:, :e]                                # [1, E]


def init_params(key):
    D, H, He, F = D_IN, H_NODE, H_EDGE, F_COMB
    ks = iter(jax.random.split(key, 16))

    def w(shape, scale=0.3):
        return scale * jax.random.normal(next(ks), shape, jnp.float32)

    def b(dim, scale=0.05):
        return scale * jax.random.normal(next(ks), (dim,), jnp.float32)

    p = {
        "wi1": w((D, H)), "bi1": b(H),
        "wi2": w((H, H)), "bi2": b(H),
        "wi3": w((H, H)), "bi3": b(H),
        "we1": w((2 * F, He)), "be1": b(He),
        "we2": w((He, 1)), "be2": jnp.zeros((1,), jnp.float32),
        "wn1": w((3 * F, H)), "bn1": b(H),
        "wn2": w((H, H)), "bn2": b(H),
    }
    for tag in ("i1", "i2", "i3", "e1", "n1", "n2"):
        p["g" + tag] = jnp.ones((H,), jnp.float32)
        p["z" + tag] = jnp.zeros((H,), jnp.float32)
    return p


def reference_forward(nodes, edges, p):
    """Pure-JAX f32 reference with the same assumed Edge/Node network internals."""
    x = nodes[0].astype(jnp.float32)
    src, dst = edges[0, :, 0], edges[0, :, 1]
    n, F = x.shape[0], F_COMB
    nid = jnp.arange(n, dtype=src.dtype)
    ain = (src[None, :] == nid[:, None]).astype(jnp.float32)     # [N, E]
    aout = (dst[None, :] == nid[:, None]).astype(jnp.float32)

    def ln(v, g, b):
        m = v.mean(-1, keepdims=True)
        var = ((v - m) ** 2).mean(-1, keepdims=True)
        return (v - m) * jax.lax.rsqrt(var + LN_EPS) * g + b

    h = jnp.tanh(ln(x @ p["wi1"] + p["bi1"], p["gi1"], p["zi1"]))
    h = jnp.tanh(ln(h @ p["wi2"] + p["bi2"], p["gi2"], p["zi2"]))
    h = jnp.tanh(ln(h @ p["wi3"] + p["bi3"], p["gi3"], p["zi3"]))
    hx = jnp.concatenate([2.0 * h, x], axis=-1)

    def edge_net(hx):
        bsel = ain.T @ hx
        esel = aout.T @ hx
        z = jnp.tanh(ln(bsel @ p["we1"][:F] + esel @ p["we1"][F:] + p["be1"],
                        p["ge1"], p["ze1"]))
        return jax.nn.sigmoid(z @ p["we2"] + p["be2"]), bsel, esel

    for _ in range(N_ITER):
        h_prev = h
        w, bsel, esel = edge_net(hx)
        m_in = ain @ (w * esel)
        m_out = aout @ (w * bsel)
        z = jnp.tanh(ln(m_in @ p["wn1"][:F] + m_out @ p["wn1"][F:2 * F] +
                        hx @ p["wn1"][2 * F:] + p["bn1"], p["gn1"], p["zn1"]))
        h = jnp.tanh(ln(z @ p["wn2"] + p["bn2"], p["gn2"], p["zn2"]))
        hx = jnp.concatenate([h_prev + h, x], axis=-1)

    w, _, _ = edge_net(hx)
    return w[:, 0][None, :]


if __name__ == "__main__":
    key = jax.random.PRNGKey(0)
    k_nodes, k_edges, k_params = jax.random.split(key, 3)

    N, E = 64, 128
    nodes = jax.random.normal(k_nodes, (1, N, D_IN), jnp.float32)
    edges = jax.random.randint(k_edges, (1, E, 2), 0, N, dtype=jnp.int32)
    params = init_params(k_params)

    out = segment_classifier_forward(nodes, edges, params)
    out = jax.block_until_ready(out)

    assert out.shape == (1, E), out.shape
    assert bool(jnp.all(jnp.isfinite(out)))
    assert bool(jnp.all((out >= 0.0) & (out <= 1.0)))

    ref = reference_forward(nodes, edges, params)
    err = float(jnp.max(jnp.abs(out - ref)))
    assert err < 5e-2, f"max |pallas - reference| = {err}"
    print("KERNEL_OK")
</pallas_src>

<mosaic_0001>
module attributes {stable_mosaic.version = 11 : i64} {
  func.func @_segment_classifier_kernel(%arg0: i32, %arg1: i32, %arg2: memref<8x128xf32, #tpu.memory_space<vmem>>, %arg3: memref<128x1xi32, #tpu.memory_space<vmem>>, %arg4: memref<128x1xi32, #tpu.memory_space<vmem>>, %arg5: memref<1x128xi32, #tpu.memory_space<vmem>>, %arg6: memref<1x128xi32, #tpu.memory_space<vmem>>, %arg7: memref<80x16xf32, #tpu.memory_space<vmem>>, %arg8: memref<152x1xf32, #tpu.memory_space<vmem>>, %arg9: memref<1x128xf32, #tpu.memory_space<vmem>>, %arg10: memref<8x128xf32, #tpu.memory_space<vmem>>, %arg11: memref<16x128xf32, #tpu.memory_space<vmem>>, %arg12: memref<16x128xf32, #tpu.memory_space<vmem>>, %arg13: memref<16x128xf32, #tpu.memory_space<vmem>>) attributes {dimension_semantics = [#tpu.dimension_semantics<arbitrary>, #tpu.dimension_semantics<arbitrary>], iteration_bounds = array<i64: 4, 1>, scalar_prefetch = 0 : i64, scratch_operands = 4 : i64, tpu.core_type = #tpu.core_type<tc>, window_params = [{pipeline_mode = #tpu.pipeline_mode<synchronous>, transform_indices = @transform_0, window_bounds = array<i64: 8, 128>}, {transform_indices = @transform_1, window_bounds = array<i64: 128, 1>}, {transform_indices = @transform_2, window_bounds = array<i64: 128, 1>}, {transform_indices = @transform_3, window_bounds = array<i64: 1, 128>}, {transform_indices = @transform_4, window_bounds = array<i64: 1, 128>}, {pipeline_mode = #tpu.pipeline_mode<synchronous>, transform_indices = @transform_5, window_bounds = array<i64: 80, 16>}, {pipeline_mode = #tpu.pipeline_mode<synchronous>, transform_indices = @transform_6, window_bounds = array<i64: 152, 1>}, {transform_indices = @transform_7, window_bounds = array<i64: 1, 128>}]} {
    %c0 = arith.constant 0 : index
    %c0_0 = arith.constant 0 : index
    %0 = vector.load %arg7[%c0, %c0_0] : memref<80x16xf32, #tpu.memory_space<vmem>>, vector<80x16xf32>
    %c0_1 = arith.constant 0 : index
    %c0_2 = arith.constant 0 : index
    %1 = vector.load %arg8[%c0_1, %c0_2] : memref<152x1xf32, #tpu.memory_space<vmem>>, vector<152x1xf32>
    %2 = vector.extract_strided_slice %0 {offsets = [0, 0], sizes = [8, 8], strides = [1, 1]} : vector<80x16xf32> to vector<8x8xf32>
    %3 = vector.extract_strided_slice %0 {offsets = [8, 0], sizes = [8, 8], strides = [1, 1]} : vector<80x16xf32> to vector<8x8xf32>
    %4 = vector.extract_strided_slice %0 {offsets = [16, 0], sizes = [8, 8], strides = [1, 1]} : vector<80x16xf32> to vector<8x8xf32>
    %5 = vector.extract_strided_slice %0 {offsets = [24, 0], sizes = [8, 16], strides = [1, 1]} : vector<80x16xf32> to vector<8x16xf32>
    %6 = vector.extract_strided_slice %0 {offsets = [32, 0], sizes = [8, 16], strides = [1, 1]} : vector<80x16xf32> to vector<8x16xf32>
    %7 = vector.extract_strided_slice %0 {offsets = [40, 0], sizes = [1, 8], strides = [1, 1]} : vector<80x16xf32> to vector<1x8xf32>
    %8 = vector.extract_strided_slice %0 {offsets = [48, 0], sizes = [8, 16], strides = [1, 1]} : vector<80x16xf32> to vector<8x16xf32>
    %9 = vector.extract_strided_slice %0 {offsets = [56, 0], sizes = [8, 16], strides = [1, 1]} : vector<80x16xf32> to vector<8x16xf32>
    %10 = vector.extract_strided_slice %0 {offsets = [64, 0], sizes = [8, 16], strides = [1, 1]} : vector<80x16xf32> to vector<8x16xf32>
    %11 = vector.extract_strided_slice %0 {offsets = [72, 0], sizes = [8, 8], strides = [1, 1]} : vector<80x16xf32> to vector<8x8xf32>
    %12 = vector.extract_strided_slice %1 {offsets = [0, 0], sizes = [8, 1], strides = [1, 1]} : vector<152x1xf32> to vector<8x1xf32>
    %13 = vector.extract_strided_slice %1 {offsets = [8, 0], sizes = [8, 1], strides = [1, 1]} : vector<152x1xf32> to vector<8x1xf32>
    %14 = vector.extract_strided_slice %1 {offsets = [16, 0], sizes = [8, 1], strides = [1, 1]} : vector<152x1xf32> to vector<8x1xf32>
    %15 = vector.extract_strided_slice %1 {offsets = [24, 0], sizes = [8, 1], strides = [1, 1]} : vector<152x1xf32> to vector<8x1xf32>
    %16 = vector.extract_strided_slice %1 {offsets = [32, 0], sizes = [8, 1], strides = [1, 1]} : vector<152x1xf32> to vector<8x1xf32>
    %17 = vector.extract_strided_slice %1 {offsets = [40, 0], sizes = [8, 1], strides = [1, 1]} : vector<152x1xf32> to vector<8x1xf32>
    %18 = vector.extract_strided_slice %1 {offsets = [48, 0], sizes = [8, 1], strides = [1, 1]} : vector<152x1xf32> to vector<8x1xf32>
    %19 = vector.extract_strided_slice %1 {offsets = [56, 0], sizes = [8, 1], strides = [1, 1]} : vector<152x1xf32> to vector<8x1xf32>
    %20 = vector.extract_strided_slice %1 {offsets = [64, 0], sizes = [8, 1], strides = [1, 1]} : vector<152x1xf32> to vector<8x1xf32>
    %21 = vector.extract_strided_slice %1 {offsets = [72, 0], sizes = [8, 1], strides = [1, 1]} : vector<152x1xf32> to vector<8x1xf32>
    %22 = vector.extract_strided_slice %1 {offsets = [80, 0], sizes = [8, 1], strides = [1, 1]} : vector<152x1xf32> to vector<8x1xf32>
    %23 = vector.extract_strided_slice %1 {offsets = [88, 0], sizes = [8, 1], strides = [1, 1]} : vector<152x1xf32> to vector<8x1xf32>
    %24 = vector.extract_strided_slice %1 {offsets = [96, 0], sizes = [8, 1], strides = [1, 1]} : vector<152x1xf32> to vector<8x1xf32>
    %25 = vector.extract_strided_slice %1 {offsets = [104, 0], sizes = [8, 1], strides = [1, 1]} : vector<152x1xf32> to vector<8x1xf32>
    %26 = vector.extract_strided_slice %1 {offsets = [112, 0], sizes = [8, 1], strides = [1, 1]} : vector<152x1xf32> to vector<8x1xf32>
    %27 = vector.extract_strided_slice %1 {offsets = [120, 0], sizes = [8, 1], strides = [1, 1]} : vector<152x1xf32> to vector<8x1xf32>
    %28 = vector.extract_strided_slice %1 {offsets = [128, 0], sizes = [8, 1], strides = [1, 1]} : vector<152x1xf32> to vector<8x1xf32>
    %29 = vector.extract_strided_slice %1 {offsets = [136, 0], sizes = [8, 1], strides = [1, 1]} : vector<152x1xf32> to vector<8x1xf32>
    %30 = vector.extract_strided_slice %1 {offsets = [144, 0], sizes = [1, 1], strides = [1, 1]} : vector<152x1xf32> to vector<1x1xf32>
    %c0_3 = arith.constant 0 : index
    %c0_4 = arith.constant 0 : index
    %31 = vector.load %arg2[%c0_3, %c0_4] : memref<8x128xf32, #tpu.memory_space<vmem>>, vector<8x128xf32>
    %c0_i32 = arith.constant 0 : i32
    %32 = arith.cmpi eq, %arg0, %c0_i32 : i32
    %c0_i32_5 = arith.constant 0 : i32
    %33 = arith.cmpi eq, %arg1, %c0_i32_5 : i32
    %34 = arith.andi %32, %33 : i1
    %35 = arith.extui %34 : i1 to i32
    %c0_i32_6 = arith.constant 0 : i32
    %36 = arith.cmpi ne, %35, %c0_i32_6 : i32
    scf.if %36 {
      %cst_35 = arith.constant dense<0.000000e+00> : vector<8x128xf32>
      %113 = tpu.matmul %2, %31, %cst_35 {dimension_numbers = #tpu.dot_dimension_numbers<[1], [0], [0], [1], [0, 0, 1, 1], [], []>} : vector<8x8xf32>, vector<8x128xf32>, vector<8x128xf32> -> vector<8x128xf32>
      %114 = vector.broadcast %12 : vector<8x1xf32> to vector<8x128xf32>
      %115 = arith.addf %113, %114 : vector<8x128xf32>
      %cst_36 = arith.constant dense<0.000000e+00> : vector<128xf32>
      %116 = vector.multi_reduction <add>, %115, %cst_36 [0] : vector<8x128xf32> to vector<128xf32>
      %117 = vector.shape_cast %116 : vector<128xf32> to vector<1x128xf32>
      %cst_37 = arith.constant 8.000000e+00 : f32
      %118 = vector.broadcast %cst_37 : f32 to vector<1x128xf32>
      %119 = arith.divf %117, %118 : vector<1x128xf32>
      %120 = vector.broadcast %119 : vector<1x128xf32> to vector<8x128xf32>
      %121 = arith.subf %115, %120 : vector<8x128xf32>
      %122 = arith.mulf %121, %121 : vector<8x128xf32>
      %cst_38 = arith.constant dense<0.000000e+00> : vector<128xf32>
      %123 = vector.multi_reduction <add>, %122, %cst_38 [0] : vector<8x128xf32> to vector<128xf32>
      %124 = vector.shape_cast %123 : vector<128xf32> to vector<1x128xf32>
      %cst_39 = arith.constant 8.000000e+00 : f32
      %125 = vector.broadcast %cst_39 : f32 to vector<1x128xf32>
      %126 = arith.divf %124, %125 : vector<1x128xf32>
      %cst_40 = arith.constant 9.99999974E-6 : f32
      %127 = vector.broadcast %cst_40 : f32 to vector<1x128xf32>
      %128 = arith.addf %126, %127 : vector<1x128xf32>
      %129 = math.rsqrt %128 : vector<1x128xf32>
      %130 = vector.broadcast %129 : vector<1x128xf32> to vector<8x128xf32>
      %131 = arith.mulf %121, %130 : vector<8x128xf32>
      %132 = vector.broadcast %13 : vector<8x1xf32> to vector<8x128xf32>
      %133 = arith.mulf %131, %132 : vector<8x128xf32>
      %134 = vector.broadcast %14 : vector<8x1xf32> to vector<8x128xf32>
      %135 = arith.addf %133, %134 : vector<8x128xf32>
      %136 = math.tanh %135 : vector<8x128xf32>
      %cst_41 = arith.constant dense<0.000000e+00> : vector<8x128xf32>
      %137 = tpu.matmul %3, %136, %cst_41 {dimension_numbers = #tpu.dot_dimension_numbers<[1], [0], [0], [1], [0, 0, 1, 1], [], []>} : vector<8x8xf32>, vector<8x128xf32>, vector<8x128xf32> -> vector<8x128xf32>
      %138 = vector.broadcast %15 : vector<8x1xf32> to vector<8x128xf32>
      %139 = arith.addf %137, %138 : vector<8x128xf32>
      %cst_42 = arith.constant dense<0.000000e+00> : vector<128xf32>
      %140 = vector.multi_reduction <add>, %139, %cst_42 [0] : vector<8x128xf32> to vector<128xf32>
      %141 = vector.shape_cast %140 : vector<128xf32> to vector<1x128xf32>
      %cst_43 = arith.constant 8.000000e+00 : f32
      %142 = vector.broadcast %cst_43 : f32 to vector<1x128xf32>
      %143 = arith.divf %141, %142 : vector<1x128xf32>
      %144 = vector.broadcast %143 : vector<1x128xf32> to vector<8x128xf32>
      %145 = arith.subf %139, %144 : vector<8x128xf32>
      %146 = arith.mulf %145, %145 : vector<8x128xf32>
      %cst_44 = arith.constant dense<0.000000e+00> : vector<128xf32>
      %147 = vector.multi_reduction <add>, %146, %cst_44 [0] : vector<8x128xf32> to vector<128xf32>
      %148 = vector.shape_cast %147 : vector<128xf32> to vector<1x128xf32>
      %cst_45 = arith.constant 8.000000e+00 : f32
      %149 = vector.broadcast %cst_45 : f32 to vector<1x128xf32>
      %150 = arith.divf %148, %149 : vector<1x128xf32>
      %cst_46 = arith.constant 9.99999974E-6 : f32
      %151 = vector.broadcast %cst_46 : f32 to vector<1x128xf32>
      %152 = arith.addf %150, %151 : vector<1x128xf32>
      %153 = math.rsqrt %152 : vector<1x128xf32>
      %154 = vector.broadcast %153 : vector<1x128xf32> to vector<8x128xf32>
      %155 = arith.mulf %145, %154 : vector<8x128xf32>
      %156 = vector.broadcast %16 : vector<8x1xf32> to vector<8x128xf32>
      %157 = arith.mulf %155, %156 : vector<8x128xf32>
      %158 = vector.broadcast %17 : vector<8x1xf32> to vector<8x128xf32>
      %159 = arith.addf %157, %158 : vector<8x128xf32>
      %160 = math.tanh %159 : vector<8x128xf32>
      %cst_47 = arith.constant dense<0.000000e+00> : vector<8x128xf32>
      %161 = tpu.matmul %4, %160, %cst_47 {dimension_numbers = #tpu.dot_dimension_numbers<[1], [0], [0], [1], [0, 0, 1, 1], [], []>} : vector<8x8xf32>, vector<8x128xf32>, vector<8x128xf32> -> vector<8x128xf32>
      %162 = vector.broadcast %18 : vector<8x1xf32> to vector<8x128xf32>
      %163 = arith.addf %161, %162 : vector<8x128xf32>
      %cst_48 = arith.constant dense<0.000000e+00> : vector<128xf32>
      %164 = vector.multi_reduction <add>, %163, %cst_48 [0] : vector<8x128xf32> to vector<128xf32>
      %165 = vector.shape_cast %164 : vector<128xf32> to vector<1x128xf32>
      %cst_49 = arith.constant 8.000000e+00 : f32
      %166 = vector.broadcast %cst_49 : f32 to vector<1x128xf32>
      %167 = arith.divf %165, %166 : vector<1x128xf32>
      %168 = vector.broadcast %167 : vector<1x128xf32> to vector<8x128xf32>
      %169 = arith.subf %163, %168 : vector<8x128xf32>
      %170 = arith.mulf %169, %169 : vector<8x128xf32>
      %cst_50 = arith.constant dense<0.000000e+00> : vector<128xf32>
      %171 = vector.multi_reduction <add>, %170, %cst_50 [0] : vector<8x128xf32> to vector<128xf32>
      %172 = vector.shape_cast %171 : vector<128xf32> to vector<1x128xf32>
      %cst_51 = arith.constant 8.000000e+00 : f32
      %173 = vector.broadcast %cst_51 : f32 to vector<1x128xf32>
      %174 = arith.divf %172, %173 : vector<1x128xf32>
      %cst_52 = arith.constant 9.99999974E-6 : f32
      %175 = vector.broadcast %cst_52 : f32 to vector<1x128xf32>
      %176 = arith.addf %174, %175 : vector<1x128xf32>
      %177 = math.rsqrt %176 : vector<1x128xf32>
      %178 = vector.broadcast %177 : vector<1x128xf32> to vector<8x128xf32>
      %179 = arith.mulf %169, %178 : vector<8x128xf32>
      %180 = vector.broadcast %19 : vector<8x1xf32> to vector<8x128xf32>
      %181 = arith.mulf %179, %180 : vector<8x128xf32>
      %182 = vector.broadcast %20 : vector<8x1xf32> to vector<8x128xf32>
      %183 = arith.addf %181, %182 : vector<8x128xf32>
      %184 = math.tanh %183 : vector<8x128xf32>
      %c0_53 = arith.constant 0 : index
      %c0_54 = arith.constant 0 : index
      %185 = vector.load %arg10[%c0_53, %c0_54] : memref<8x128xf32, #tpu.memory_space<vmem>>, vector<8x128xf32>
      tpu.vector_store %arg10[%c0_53, %c0_54], %184 {strides = array<i32>} : memref<8x128xf32, #tpu.memory_space<vmem>>, vector<8x128xf32>,
      %cst_55 = arith.constant 2.000000e+00 : f32
      %186 = vector.broadcast %cst_55 : f32 to vector<8x128xf32>
      %187 = arith.mulf %186, %184 : vector<8x128xf32>
      %c0_56 = arith.constant 0 : index
      %c0_57 = arith.constant 0 : index
      %188 = vector.load %arg11[%c0_56, %c0_57] : memref<16x128xf32, #tpu.memory_space<vmem>>, vector<8x128xf32>
      tpu.vector_store %arg11[%c0_56, %c0_57], %187 {strides = array<i32>} : memref<16x128xf32, #tpu.memory_space<vmem>>, vector<8x128xf32>,
      %c8 = arith.constant 8 : index
      %c0_58 = arith.constant 0 : index
      %189 = vector.load %arg11[%c8, %c0_58] : memref<16x128xf32, #tpu.memory_space<vmem>>, vector<8x128xf32>
      tpu.vector_store %arg11[%c8, %c0_58], %31 {strides = array<i32>} : memref<16x128xf32, #tpu.memory_space<vmem>>, vector<8x128xf32>,
    } else {
    }
    %c0_i32_7 = arith.constant 0 : i32
    %37 = arith.cmpi eq, %arg1, %c0_i32_7 : i32
    %38 = arith.extui %37 : i1 to i32
    %c0_i32_8 = arith.constant 0 : i32
    %39 = arith.cmpi ne, %38, %c0_i32_8 : i32
    scf.if %39 {
      %cst_35 = arith.constant 0.000000e+00 : f32
      %113 = vector.broadcast %cst_35 : f32 to vector<16x128xf32>
      %c0_36 = arith.constant 0 : index
      %c0_37 = arith.constant 0 : index
      %114 = vector.load %arg12[%c0_36, %c0_37] : memref<16x128xf32, #tpu.memory_space<vmem>>, vector<16x128xf32>
      tpu.vector_store %arg12[%c0_36, %c0_37], %113 {strides = array<i32>} : memref<16x128xf32, #tpu.memory_space<vmem>>, vector<16x128xf32>,
      %cst_38 = arith.constant 0.000000e+00 : f32
      %115 = vector.broadcast %cst_38 : f32 to vector<16x128xf32>
      %c0_39 = arith.constant 0 : index
      %c0_40 = arith.constant 0 : index
      %116 = vector.load %arg13[%c0_39, %c0_40] : memref<16x128xf32, #tpu.memory_space<vmem>>, vector<16x128xf32>
      tpu.vector_store %arg13[%c0_39, %c0_40], %115 {strides = array<i32>} : memref<16x128xf32, #tpu.memory_space<vmem>>, vector<16x128xf32>,
    } else {
    }
    %c0_9 = arith.constant 0 : index
    %c0_10 = arith.constant 0 : index
    %40 = vector.load %arg11[%c0_9, %c0_10] : memref<16x128xf32, #tpu.memory_space<vmem>>, vector<16x128xf32>
    %41 = arith.truncf %40 : vector<16x128xf32> to vector<16x128xbf16>
    %c0_11 = arith.constant 0 : index
    %c0_12 = arith.constant 0 : index
    %42 = vector.load %arg3[%c0_11, %c0_12] : memref<128x1xi32, #tpu.memory_space<vmem>>, vector<128x1xi32>
    %c0_13 = arith.constant 0 : index
    %c0_14 = arith.constant 0 : index
    %43 = vector.load %arg4[%c0_13, %c0_14] : memref<128x1xi32, #tpu.memory_space<vmem>>, vector<128x1xi32>
    %c0_15 = arith.constant 0 : index
    %c0_16 = arith.constant 0 : index
    %44 = vector.load %arg5[%c0_15, %c0_16] : memref<1x128xi32, #tpu.memory_space<vmem>>, vector<1x128xi32>
    %c0_17 = arith.constant 0 : index
    %c0_18 = arith.constant 0 : index
    %45 = vector.load %arg6[%c0_17, %c0_18] : memref<1x128xi32, #tpu.memory_space<vmem>>, vector<1x128xi32>
    %46 = tpu.iota {dimensions = array<i32: 1>} : vector<128x128xi32>
    %47 = tpu.iota {dimensions = array<i32: 0>} : vector<128x128xi32>
    %48 = vector.broadcast %42 : vector<128x1xi32> to vector<128x128xi32>
    %49 = arith.cmpi eq, %48, %46 : vector<128x128xi32>
    %50 = arith.extui %49 : vector<128x128xi1> to vector<128x128xi32>
    %51 = arith.sitofp %50 : vector<128x128xi32> to vector<128x128xf32>
    %52 = arith.truncf %51 : vector<128x128xf32> to vector<128x128xbf16>
    %53 = vector.broadcast %43 : vector<128x1xi32> to vector<128x128xi32>
    %54 = arith.cmpi eq, %53, %46 : vector<128x128xi32>
    %55 = arith.extui %54 : vector<128x128xi1> to vector<128x128xi32>
    %56 = arith.sitofp %55 : vector<128x128xi32> to vector<128x128xf32>
    %57 = arith.truncf %56 : vector<128x128xf32> to vector<128x128xbf16>
    %58 = vector.broadcast %44 : vector<1x128xi32> to vector<128x128xi32>
    %59 = arith.cmpi eq, %58, %47 : vector<128x128xi32>
    %60 = arith.extui %59 : vector<128x128xi1> to vector<128x128xi32>
    %61 = arith.sitofp %60 : vector<128x128xi32> to vector<128x128xf32>
    %62 = arith.truncf %61 : vector<128x128xf32> to vector<128x128xbf16>
    %63 = vector.broadcast %45 : vector<1x128xi32> to vector<128x128xi32>
    %64 = arith.cmpi eq, %63, %47 : vector<128x128xi32>
    %65 = arith.extui %64 : vector<128x128xi1> to vector<128x128xi32>
    %66 = arith.sitofp %65 : vector<128x128xi32> to vector<128x128xf32>
    %67 = arith.truncf %66 : vector<128x128xf32> to vector<128x128xbf16>
    %cst = arith.constant dense<0.000000e+00> : vector<16x128xf32>
    %68 = tpu.matmul %41, %62, %cst {dimension_numbers = #tpu.dot_dimension_numbers<[1], [0], [0], [1], [0, 0, 1, 1], [], []>} : vector<16x128xbf16>, vector<128x128xbf16>, vector<16x128xf32> -> vector<16x128xf32>
    %cst_19 = arith.constant dense<0.000000e+00> : vector<16x128xf32>
    %69 = tpu.matmul %41, %67, %cst_19 {dimension_numbers = #tpu.dot_dimension_numbers<[1], [0], [0], [1], [0, 0, 1, 1], [], []>} : vector<16x128xbf16>, vector<128x128xbf16>, vector<16x128xf32> -> vector<16x128xf32>
    %cst_20 = arith.constant dense<0.000000e+00> : vector<8x128xf32>
    %70 = tpu.matmul %5, %68, %cst_20 {dimension_numbers = #tpu.dot_dimension_numbers<[1], [0], [0], [1], [0, 0, 1, 1], [], []>} : vector<8x16xf32>, vector<16x128xf32>, vector<8x128xf32> -> vector<8x128xf32>
    %cst_21 = arith.constant dense<0.000000e+00> : vector<8x128xf32>
    %71 = tpu.matmul %6, %69, %cst_21 {dimension_numbers = #tpu.dot_dimension_numbers<[1], [0], [0], [1], [0, 0, 1, 1], [], []>} : vector<8x16xf32>, vector<16x128xf32>, vector<8x128xf32> -> vector<8x128xf32>
    %72 = arith.addf %70, %71 : vector<8x128xf32>
    %73 = vector.broadcast %21 : vector<8x1xf32> to vector<8x128xf32>
    %74 = arith.addf %72, %73 : vector<8x128xf32>
    %cst_22 = arith.constant dense<0.000000e+00> : vector<128xf32>
    %75 = vector.multi_reduction <add>, %74, %cst_22 [0] : vector<8x128xf32> to vector<128xf32>
    %76 = vector.shape_cast %75 : vector<128xf32> to vector<1x128xf32>
    %cst_23 = arith.constant 8.000000e+00 : f32
    %77 = vector.broadcast %cst_23 : f32 to vector<1x128xf32>
    %78 = arith.divf %76, %77 : vector<1x128xf32>
    %79 = vector.broadcast %78 : vector<1x128xf32> to vector<8x128xf32>
    %80 = arith.subf %74, %79 : vector<8x128xf32>
    %81 = arith.mulf %80, %80 : vector<8x128xf32>
    %cst_24 = arith.constant dense<0.000000e+00> : vector<128xf32>
    %82 = vector.multi_reduction <add>, %81, %cst_24 [0] : vector<8x128xf32> to vector<128xf32>
    %83 = vector.shape_cast %82 : vector<128xf32> to vector<1x128xf32>
    %cst_25 = arith.constant 8.000000e+00 : f32
    %84 = vector.broadcast %cst_25 : f32 to vector<1x128xf32>
    %85 = arith.divf %83, %84 : vector<1x128xf32>
    %cst_26 = arith.constant 9.99999974E-6 : f32
    %86 = vector.broadcast %cst_26 : f32 to vector<1x128xf32>
    %87 = arith.addf %85, %86 : vector<1x128xf32>
    %88 = math.rsqrt %87 : vector<1x128xf32>
    %89 = vector.broadcast %88 : vector<1x128xf32> to vector<8x128xf32>
    %90 = arith.mulf %80, %89 : vector<8x128xf32>
    %91 = vector.broadcast %22 : vector<8x1xf32> to vector<8x128xf32>
    %92 = arith.mulf %90, %91 : vector<8x128xf32>
    %93 = vector.broadcast %23 : vector<8x1xf32> to vector<8x128xf32>
    %94 = arith.addf %92, %93 : vector<8x128xf32>
    %95 = math.tanh %94 : vector<8x128xf32>
    %cst_27 = arith.constant dense<0.000000e+00> : vector<1x128xf32>
    %96 = tpu.matmul %7, %95, %cst_27 {dimension_numbers = #tpu.dot_dimension_numbers<[1], [0], [0], [1], [0, 0, 1, 1], [], []>} : vector<1x8xf32>, vector<8x128xf32>, vector<1x128xf32> -> vector<1x128xf32>
    %97 = vector.broadcast %30 : vector<1x1xf32> to vector<1x128xf32>
    %98 = arith.addf %96, %97 : vector<1x128xf32>
    %99 = arith.negf %98 : vector<1x128xf32>
    %100 = math.exp %99 : vector<1x128xf32>
    %cst_28 = arith.constant 1.000000e+00 : f32
    %101 = vector.broadcast %cst_28 : f32 to vector<1x128xf32>
    %102 = arith.addf %101, %100 : vector<1x128xf32>
    %103 = arith.divf %101, %102 : vector<1x128xf32>
    %c0_29 = arith.constant 0 : index
    %c0_30 = arith.constant 0 : index
    %104 = vector.load %arg9[%c0_29, %c0_30] : memref<1x128xf32, #tpu.memory_space<vmem>>, vector<1x128xf32>
    tpu.vector_store %arg9[%c0_29, %c0_30], %103 {strides = array<i32>} : memref<1x128xf32, #tpu.memory_space<vmem>>, vector<1x128xf32>,
    %c3_i32 = arith.constant 3 : i32
    %105 = arith.cmpi slt, %arg0, %c3_i32 : i32
    %106 = arith.extui %105 : i1 to i32
    %c0_i32_31 = arith.constant 0 : i32
    %107 = arith.cmpi ne, %106, %c0_i32_31 : i32
    scf.if %107 {
      %c0_35 = arith.constant 0 : index
      %c0_36 = arith.constant 0 : index
      %113 = vector.load %arg12[%c0_35, %c0_36] : memref<16x128xf32, #tpu.memory_space<vmem>>, vector<16x128xf32>
      %114 = vector.broadcast %103 : vector<1x128xf32> to vector<16x128xf32>
      %115 = arith.mulf %114, %69 : vector<16x128xf32>
      %116 = arith.truncf %115 : vector<16x128xf32> to vector<16x128xbf16>
      %cst_37 = arith.constant dense<0.000000e+00> : vector<16x128xf32>
      %117 = tpu.matmul %116, %52, %cst_37 {dimension_numbers = #tpu.dot_dimension_numbers<[1], [0], [0], [1], [0, 0, 1, 1], [], []>} : vector<16x128xbf16>, vector<128x128xbf16>, vector<16x128xf32> -> vector<16x128xf32>
      %118 = arith.addf %113, %117 : vector<16x128xf32>
      %c0_38 = arith.constant 0 : index
      %c0_39 = arith.constant 0 : index
      %119 = vector.load %arg12[%c0_38, %c0_39] : memref<16x128xf32, #tpu.memory_space<vmem>>, vector<16x128xf32>
      tpu.vector_store %arg12[%c0_38, %c0_39], %118 {strides = array<i32>} : memref<16x128xf32, #tpu.memory_space<vmem>>, vector<16x128xf32>,
      %c0_40 = arith.constant 0 : index
      %c0_41 = arith.constant 0 : index
      %120 = vector.load %arg13[%c0_40, %c0_41] : memref<16x128xf32, #tpu.memory_space<vmem>>, vector<16x128xf32>
      %121 = vector.broadcast %103 : vector<1x128xf32> to vector<16x128xf32>
      %122 = arith.mulf %121, %68 : vector<16x128xf32>
      %123 = arith.truncf %122 : vector<16x128xf32> to vector<16x128xbf16>
      %cst_42 = arith.constant dense<0.000000e+00> : vector<16x128xf32>
      %124 = tpu.matmul %123, %57, %cst_42 {dimension_numbers = #tpu.dot_dimension_numbers<[1], [0], [0], [1], [0, 0, 1, 1], [], []>} : vector<16x128xbf16>, vector<128x128xbf16>, vector<16x128xf32> -> vector<16x128xf32>
      %125 = arith.addf %120, %124 : vector<16x128xf32>
      %c0_43 = arith.constant 0 : index
      %c0_44 = arith.constant 0 : index
      %126 = vector.load %arg13[%c0_43, %c0_44] : memref<16x128xf32, #tpu.memory_space<vmem>>, vector<16x128xf32>
      tpu.vector_store %arg13[%c0_43, %c0_44], %125 {strides = array<i32>} : memref<16x128xf32, #tpu.memory_space<vmem>>, vector<16x128xf32>,
    } else {
    }
    %c3_i32_32 = arith.constant 3 : i32
    %108 = arith.cmpi slt, %arg0, %c3_i32_32 : i32
    %c0_i32_33 = arith.constant 0 : i32
    %109 = arith.cmpi eq, %arg1, %c0_i32_33 : i32
    %110 = arith.andi %108, %109 : i1
    %111 = arith.extui %110 : i1 to i32
    %c0_i32_34 = arith.constant 0 : i32
    %112 = arith.cmpi ne, %111, %c0_i32_34 : i32
    scf.if %112 {
      %c0_35 = arith.constant 0 : index
      %c0_36 = arith.constant 0 : index
      %113 = vector.load %arg12[%c0_35, %c0_36] : memref<16x128xf32, #tpu.memory_space<vmem>>, vector<16x128xf32>
      %cst_37 = arith.constant dense<0.000000e+00> : vector<8x128xf32>
      %114 = tpu.matmul %8, %113, %cst_37 {dimension_numbers = #tpu.dot_dimension_numbers<[1], [0], [0], [1], [0, 0, 1, 1], [], []>} : vector<8x16xf32>, vector<16x128xf32>, vector<8x128xf32> -> vector<8x128xf32>
      %c0_38 = arith.constant 0 : index
      %c0_39 = arith.constant 0 : index
      %115 = vector.load %arg13[%c0_38, %c0_39] : memref<16x128xf32, #tpu.memory_space<vmem>>, vector<16x128xf32>
      %cst_40 = arith.constant dense<0.000000e+00> : vector<8x128xf32>
      %116 = tpu.matmul %9, %115, %cst_40 {dimension_numbers = #tpu.dot_dimension_numbers<[1], [0], [0], [1], [0, 0, 1, 1], [], []>} : vector<8x16xf32>, vector<16x128xf32>, vector<8x128xf32> -> vector<8x128xf32>
      %117 = arith.addf %114, %116 : vector<8x128xf32>
      %cst_41 = arith.constant dense<0.000000e+00> : vector<8x128xf32>
      %118 = tpu.matmul %10, %40, %cst_41 {dimension_numbers = #tpu.dot_dimension_numbers<[1], [0], [0], [1], [0, 0, 1, 1], [], []>} : vector<8x16xf32>, vector<16x128xf32>, vector<8x128xf32> -> vector<8x128xf32>
      %119 = arith.addf %117, %118 : vector<8x128xf32>
      %120 = vector.broadcast %24 : vector<8x1xf32> to vector<8x128xf32>
      %121 = arith.addf %119, %120 : vector<8x128xf32>
      %cst_42 = arith.constant dense<0.000000e+00> : vector<128xf32>
      %122 = vector.multi_reduction <add>, %121, %cst_42 [0] : vector<8x128xf32> to vector<128xf32>
      %123 = vector.shape_cast %122 : vector<128xf32> to vector<1x128xf32>
      %cst_43 = arith.constant 8.000000e+00 : f32
      %124 = vector.broadcast %cst_43 : f32 to vector<1x128xf32>
      %125 = arith.divf %123, %124 : vector<1x128xf32>
      %126 = vector.broadcast %125 : vector<1x128xf32> to vector<8x128xf32>
      %127 = arith.subf %121, %126 : vector<8x128xf32>
      %128 = arith.mulf %127, %127 : vector<8x128xf32>
      %cst_44 = arith.constant dense<0.000000e+00> : vector<128xf32>
      %129 = vector.multi_reduction <add>, %128, %cst_44 [0] : vector<8x128xf32> to vector<128xf32>
      %130 = vector.shape_cast %129 : vector<128xf32> to vector<1x128xf32>
      %cst_45 = arith.constant 8.000000e+00 : f32
      %131 = vector.broadcast %cst_45 : f32 to vector<1x128xf32>
      %132 = arith.divf %130, %131 : vector<1x128xf32>
      %cst_46 = arith.constant 9.99999974E-6 : f32
      %133 = vector.broadcast %cst_46 : f32 to vector<1x128xf32>
      %134 = arith.addf %132, %133 : vector<1x128xf32>
      %135 = math.rsqrt %134 : vector<1x128xf32>
      %136 = vector.broadcast %135 : vector<1x128xf32> to vector<8x128xf32>
      %137 = arith.mulf %127, %136 : vector<8x128xf32>
      %138 = vector.broadcast %25 : vector<8x1xf32> to vector<8x128xf32>
      %139 = arith.mulf %137, %138 : vector<8x128xf32>
      %140 = vector.broadcast %26 : vector<8x1xf32> to vector<8x128xf32>
      %141 = arith.addf %139, %140 : vector<8x128xf32>
      %142 = math.tanh %141 : vector<8x128xf32>
      %cst_47 = arith.constant dense<0.000000e+00> : vector<8x128xf32>
      %143 = tpu.matmul %11, %142, %cst_47 {dimension_numbers = #tpu.dot_dimension_numbers<[1], [0], [0], [1], [0, 0, 1, 1], [], []>} : vector<8x8xf32>, vector<8x128xf32>, vector<8x128xf32> -> vector<8x128xf32>
      %144 = vector.broadcast %27 : vector<8x1xf32> to vector<8x128xf32>
      %145 = arith.addf %143, %144 : vector<8x128xf32>
      %cst_48 = arith.constant dense<0.000000e+00> : vector<128xf32>
      %146 = vector.multi_reduction <add>, %145, %cst_48 [0] : vector<8x128xf32> to vector<128xf32>
      %147 = vector.shape_cast %146 : vector<128xf32> to vector<1x128xf32>
      %cst_49 = arith.constant 8.000000e+00 : f32
      %148 = vector.broadcast %cst_49 : f32 to vector<1x128xf32>
      %149 = arith.divf %147, %148 : vector<1x128xf32>
      %150 = vector.broadcast %149 : vector<1x128xf32> to vector<8x128xf32>
      %151 = arith.subf %145, %150 : vector<8x128xf32>
      %152 = arith.mulf %151, %151 : vector<8x128xf32>
      %cst_50 = arith.constant dense<0.000000e+00> : vector<128xf32>
      %153 = vector.multi_reduction <add>, %152, %cst_50 [0] : vector<8x128xf32> to vector<128xf32>
      %154 = vector.shape_cast %153 : vector<128xf32> to vector<1x128xf32>
      %cst_51 = arith.constant 8.000000e+00 : f32
      %155 = vector.broadcast %cst_51 : f32 to vector<1x128xf32>
      %156 = arith.divf %154, %155 : vector<1x128xf32>
      %cst_52 = arith.constant 9.99999974E-6 : f32
      %157 = vector.broadcast %cst_52 : f32 to vector<1x128xf32>
      %158 = arith.addf %156, %157 : vector<1x128xf32>
      %159 = math.rsqrt %158 : vector<1x128xf32>
      %160 = vector.broadcast %159 : vector<1x128xf32> to vector<8x128xf32>
      %161 = arith.mulf %151, %160 : vector<8x128xf32>
      %162 = vector.broadcast %28 : vector<8x1xf32> to vector<8x128xf32>
      %163 = arith.mulf %161, %162 : vector<8x128xf32>
      %164 = vector.broadcast %29 : vector<8x1xf32> to vector<8x128xf32>
      %165 = arith.addf %163, %164 : vector<8x128xf32>
      %166 = math.tanh %165 : vector<8x128xf32>
      %c0_53 = arith.constant 0 : index
      %c0_54 = arith.constant 0 : index
      %167 = vector.load %arg10[%c0_53, %c0_54] : memref<8x128xf32, #tpu.memory_space<vmem>>, vector<8x128xf32>
      %168 = arith.addf %167, %166 : vector<8x128xf32>
      %c0_55 = arith.constant 0 : index
      %c0_56 = arith.constant 0 : index
      %169 = vector.load %arg11[%c0_55, %c0_56] : memref<16x128xf32, #tpu.memory_space<vmem>>, vector<8x128xf32>
      tpu.vector_store %arg11[%c0_55, %c0_56], %168 {strides = array<i32>} : memref<16x128xf32, #tpu.memory_space<vmem>>, vector<8x128xf32>,
      %c0_57 = arith.constant 0 : index
      %c0_58 = arith.constant 0 : index
      %170 = vector.load %arg10[%c0_57, %c0_58] : memref<8x128xf32, #tpu.memory_space<vmem>>, vector<8x128xf32>
      tpu.vector_store %arg10[%c0_57, %c0_58], %166 {strides = array<i32>} : memref<8x128xf32, #tpu.memory_space<vmem>>, vector<8x128xf32>,
    } else {
    }
    return
  }
  func.func @transform_0(%arg0: i32, %arg1: i32) -> (i32, i32) {
    %c0_i32 = arith.constant 0 : i32
    %c0_i32_0 = arith.constant 0 : i32
    %c0_i32_1 = arith.constant 0 : i32
    return %c0_i32, %c0_i32_0 : i32, i32
  }
  func.func @transform_1(%arg0: i32, %arg1: i32) -> (i32, i32) {
    %c0_i32 = arith.constant 0 : i32
    %c0_i32_0 = arith.constant 0 : i32
    return %arg1, %c0_i32 : i32, i32
  }
  func.func @transform_2(%arg0: i32, %arg1: i32) -> (i32, i32) {
    %c0_i32 = arith.constant 0 : i32
    %c0_i32_0 = arith.constant 0 : i32
    return %arg1, %c0_i32 : i32, i32
  }
  func.func @transform_3(%arg0: i32, %arg1: i32) -> (i32, i32) {
    %c0_i32 = arith.constant 0 : i32
    %c0_i32_0 = arith.constant 0 : i32
    return %c0_i32, %arg1 : i32, i32
  }
  func.func @transform_4(%arg0: i32, %arg1: i32) -> (i32, i32) {
    %c0_i32 = arith.constant 0 : i32
    %c0_i32_0 = arith.constant 0 : i32
    return %c0_i32, %arg1 : i32, i32
  }
  func.func @transform_5(%arg0: i32, %arg1: i32) -> (i32, i32) {
    %c0_i32 = arith.constant 0 : i32
    %c0_i32_0 = arith.constant 0 : i32
    %c0_i32_1 = arith.constant 0 : i32
    return %c0_i32, %c0_i32_0 : i32, i32
  }
  func.func @transform_6(%arg0: i32, %arg1: i32) -> (i32, i32) {
    %c0_i32 = arith.constant 0 : i32
    %c0_i32_0 = arith.constant 0 : i32
    %c0_i32_1 = arith.constant 0 : i32
    return %c0_i32, %c0_i32_0 : i32, i32
  }
  func.func @transform_7(%arg0: i32, %arg1: i32) -> (i32, i32) {
    %c0_i32 = arith.constant 0 : i32
    %c0_i32_0 = arith.constant 0 : i32
    return %c0_i32, %arg1 : i32, i32
  }
}

</mosaic_0001>

<bundles_post_ra>
// kernel: tpu_custom_call.1
= control target key start
LH: loop header
LB: loop body
LE: loop exit
PB: predicated region body
PF: predicated region fallthrough
CT: control target
= control target key end

     0   :  { %12 = vsyncpa [#allocation7], 0  ;;  %s2583_s24 = smov 0   ;;  %s2585_s25 = smov 0   ;;  %s3267_s0 = inlined_call_operand.vmem [shape: f32[8,128], index: 0, kind: input, shape index: {}]   ;;  %s3268_s1 = inlined_call_operand.vmem [shape: s32[128,1], index: 1, kind: input, shape index: {}]   ;;  %s3269_s2 = inlined_call_operand.vmem [shape: s32[128,1], index: 2, kind: input, shape index: {}]   ;;  %s3270_s3 = inlined_call_operand.vmem [shape: s32[1,128], index: 3, kind: input, shape index: {}]   ;;  %s3271_s4 = inlined_call_operand.vmem [shape: s32[1,128], index: 4, kind: input, shape index: {}]   ;;  %s3272_s5 = inlined_call_operand.vmem [shape: f32[80,16], index: 5, kind: input, shape index: {}]   ;;  %s3273_s6 = inlined_call_operand.vmem [shape: f32[152,1], index: 6, kind: input, shape index: {}]   ;;  %s3274_s7 = inlined_call_operand.hbm [shape: f32[1,128], index: 7, kind: output, shape index: {}]  }
   0x1   :  { %s2587_s26 = smov 0  }
   0x2 LB: > { %s2041_s27 = sadd.s32 4294967295, %s2527_s26   ;;  %s30_s28 = sadd.s32 1, %s2523_s25  ;;  %s2527_s26 = sphi %s2587_s26, %s18_s26   ;;  %s2523_s25 = sphi %s2585_s25, %s3326_s25   ;;  %s2519_s24 = sphi %s2583_s24, %s3325_s24  }
   0x3   : > { %p32_p0 = scmp.ge.s32.totalorder %s30_s28, 4  ;;  %p2047_p1 = scmp.ge.s32.totalorder %s2527_s26, 1 }
   0x4   : > { %p278_p2 = scmp.lt.s32.totalorder %s2527_s26, 5 }
   0x5   : > { %s3328_s28 = smov (%p32_p0, %s30_s28), 0 }
   0x6   : > { %p279_p3 = pnand %p2047_p1, %p278_p2 }
   0x8   : > { %282 = sbr.rel (%p279_p3) target bundleno = 2348 (0x92c), region = 48 }
   0xd   : > { %v335_v0 = vld [vmem:[%s3272_s5] sm:$0xff]  ;;  %v2610_v1 = vld [vmem:[%s3272_s5 + $0x8] sm:$0xff]  ;;  %v2615_v2 = vld [vmem:[%s3272_s5 + $0x10] sm:$0xff]  ;;  %p365_p4 = scmp.eq.s32.totalorder %s2519_s24, 0 }
   0xe   : > { %v2621_v3 = vld [vmem:[%s3272_s5 + $0x18] sm:$0xff]  ;;  %v2626_v4 = vld [vmem:[%s3272_s5 + $0x20] sm:$0xff]  ;;  %v2631_v5 = vld [vmem:[%s3272_s5 + $0x28] sm:$0xff]  ;;  %vm376_vm0 = vcmask (%p365_p4), 64512   ;;  %v2529_v30 = vmov (%p365_p4), 0.0   ;;  %vm2530_vm1 = vmmov (%p365_p4), 0  }
   0xf   : > { %v2636_v6 = vld [vmem:[%s3272_s5 + $0x30] sm:$0xff]  ;;  %v2641_v7 = vld [vmem:[%s3272_s5 + $0x38] sm:$0xff]  ;;  %v2646_v8 = vld [vmem:[%s3272_s5 + $0x40] sm:$0xff]  ;;  %2259 = vmatprep.subr.mxu0 (%p365_p4), %v2529_v30  ;;  %2261 = vmatprep.mubr.msk.f32.mxu0 (%p365_p4), %vm2530_vm1, %v2529_v30  ;;  %v2531_v31 = vmov (%p365_p4), 0  }
  0x10   : > { %3279 = vst [vmem:[#allocation9_spill] sm:$0xff] %v2636_v6  ;;  %3280 = vst [vmem:[#allocation10_spill] sm:$0xff] %v2646_v8  ;;  %v2651_v9 = vld [vmem:[%s3272_s5 + $0x48] sm:$0xff]  ;;  %v345_v10 = vld [vmem:[%s3273_s6] sm:$0xff]  ;;  %2443 = vset.pattern.permute.xlu0 (%p365_p4), %v2531_v31  ;;  %2444 = vset.pattern.permute.xlu1 (%p365_p4), %v2531_v31 }
  0x11   : > { %3281 = vst [vmem:[#allocation11_spill] sm:$0xff] %v2651_v9  ;;  %v346_v11 = vld [vmem:[%s3273_s6 + $0x8] sm:$0xff]  ;;  %v347_v12 = vld [vmem:[%s3273_s6 + $0x10] sm:$0xff]  ;;  %v348_v13 = vld [vmem:[%s3273_s6 + $0x18] sm:$0xff]  ;;  %373 = vperm.xlu0 (%p365_p4), %2443, %v345_v10   ;;  %2264 = vmatprep.subr.mxu1 (%p365_p4), %v2529_v30 }
  0x12   : > { %v349_v14 = vld [vmem:[%s3273_s6 + $0x20] sm:$0xff]  ;;  %v350_v15 = vld [vmem:[%s3273_s6 + $0x28] sm:$0xff]  ;;  %v351_v16 = vld [vmem:[%s3273_s6 + $0x30] sm:$0xff]  ;;  %478 = vperm.xlu1 (%p365_p4), %2444, %v347_v12   ;;  %2266 = vmatprep.mubr.msk.f32.mxu1 (%p365_p4), %vm2530_vm1, %v2529_v30 }
  0x13   : > { %v352_v17 = vld [vmem:[%s3273_s6 + $0x38] sm:$0xff]  ;;  %v353_v18 = vld [vmem:[%s3273_s6 + $0x40] sm:$0xff]  ;;  %v2683_v19 = vld [vmem:[%s3273_s6 + $0x48] sm:$0xff] }
  0x14   : > { %v2688_v20 = vld [vmem:[%s3273_s6 + $0x50] sm:$0xff]  ;;  %v2693_v21 = vld [vmem:[%s3273_s6 + $0x58] sm:$0xff]  ;;  %v2698_v22 = vld [vmem:[%s3273_s6 + $0x60] sm:$0xff]  ;;  %370 = sbr.rel (!%p365_p4) target bundleno = 819 (0x333), region = 52 }
  0x15   : > { %3282 = vst [vmem:[#allocation12_spill] sm:$0xff] %v2698_v22  ;;  %v2703_v23 = vld [vmem:[%s3273_s6 + $0x68] sm:$0xff]  ;;  %v2708_v24 = vld [vmem:[%s3273_s6 + $0x70] sm:$0xff]  ;;  %v2713_v25 = vld [vmem:[%s3273_s6 + $0x78] sm:$0xff]  ;;  %472 = vperm.xlu0 (%p365_p4), %2443, %v346_v11  }
  0x16   : > { %3283 = vst [vmem:[#allocation13_spill] sm:$0xff] %v2703_v23  ;;  %3284 = vst [vmem:[#allocation14_spill] sm:$0xff] %v2708_v24  ;;  %v2718_v26 = vld [vmem:[%s3273_s6 + $0x80] sm:$0xff]  ;;  %v2723_v27 = vld [vmem:[%s3273_s6 + $0x88] sm:$0xff]  ;;  %485 = vperm.xlu1 (%p365_p4), %2444, %v348_v13  }
  0x17   : > { %3285 = vst [vmem:[#allocation15_spill] sm:$0xff] %v2713_v25  ;;  %3286 = vst [vmem:[#allocation16_spill] sm:$0xff] %v2718_v26  ;;  %v2728_v28 = vld [vmem:[%s3273_s6 + $0x90] sm:$0xff]  ;;  %v364_v29 = vld [vmem:[%s3267_s0] sm:$0xff] }
  0x18   : > { %3287 = vst [vmem:[#allocation17_spill] sm:$0xff] %v2723_v27  ;;  %706 = vst [vmem:[#allocation3 + $0x8] sm:$0xff] (%p365_p4), %v364_v29  ;;  %2260 = vmatpush3.msra.mxu0 (%p365_p4), %v364_v29 }
  0x19   : > { %2262 = vmatmul.mubr.msk.f32.vlgmr.msra.gmra.mxu0 %vm376_vm0, %v335_v0  ;;  %2269 = vmatprep.subr.mxu0 %v2529_v30 }
  0x1a   : > { %2271 = vmatprep.mubr.msk.f32.mxu0 %vm2530_vm1, %v2529_v30  ;;  %582 = vperm.xlu0 %2443, %v349_v14  }
  0x1b   : > { %588 = vperm.xlu1 %2444, %v350_v15  }
  0x1e   : > { %595 = vperm.xlu0 %2443, %v351_v16  }
  0x1f   : > { %692 = vperm.xlu1 %2444, %v352_v17  }
  0x22   : > { %698 = vperm.xlu0 %2443, %v353_v18  }
  0x8c   : > { %v374_v32 = vpop.permute.xlu0 %373 }
  0x8d   : > { %v479_v57 = vpop.permute.xlu1 %478 }
  0x90   : > { %v473_v55 = vpop.permute.xlu0 %472 }
  0x91   : > { %v486_v60 = vpop.permute.xlu1 %485 }
  0xd9   : > { %v446_v33 = vpop.f32.mrf.mxu0 }
  0xda   : > { %v447_v34 = vadd.f32 %v446_v33, %v374_v32 }
  0xdb   : > { %v2263_v35 = vpop.f32.mrf.mxu0 }
  0xdc   : > { %v450_v36 = vrot.slane %v447_v34, 4 }
  0xde   : > { %v451_v37 = vadd.f32 %v450_v36, %v447_v34 }
  0xe0   : > { %v452_v38 = vrot.slane %v451_v37, 2 }
  0xe2   : > { %v453_v39 = vadd.f32 %v452_v38, %v451_v37  ;;  %v583_v37 = vpop.permute.xlu0 %582 }
  0xe4   : > { %v454_v40 = vrot.slane %v453_v39, 1 }
  0xe6   : > { %v455_v41 = vadd.f32 %v454_v40, %v453_v39  ;;  %v589_v39 = vpop.permute.xlu1 %588 }
  0xe8   : > { %v457_v42 = vmul.f32 0.125, %v455_v41 }
  0xea   : > { %v458_v43 = vsub.f32 %v447_v34, %v457_v42  ;;  %v596_v42 = vpop.permute.xlu0 %595 }
  0xec   : > { %v459_v44 = vmul.f32 %v458_v43, %v458_v43 }
  0xee   : > { %v460_v45 = vrot.slane %v459_v44, 4 }
  0xf0   : > { %v461_v46 = vadd.f32 %v460_v45, %v459_v44 }
  0xf2   : > { %v462_v47 = vrot.slane %v461_v46, 2 }
  0xf4   : > { %v463_v48 = vadd.f32 %v462_v47, %v461_v46 }
  0xf6   : > { %v464_v49 = vrot.slane %v463_v48, 1 }
  0xf8   : > { %v465_v50 = vadd.f32 %v464_v49, %v463_v48 }
  0xfa   : > { %v466_v51 = vmul.f32 0.125, %v465_v50 }
  0xfc   : > { %v467_v52 = vadd.f32 1e-05, %v466_v51 }
  0xfe   : > { %2445 = vrsqrt.f32 %v467_v52 }
 0x10b   : > { %v2446_v53 = vpop.eup %2445 }
 0x10c   : > { %v469_v54 = vmul.f32 %v2446_v53, %v458_v43 }
 0x10e   : > { %v475_v56 = vmul.f32 %v473_v55, %v469_v54 }
 0x110   : > { %v481_v58 = vadd.f32 %v479_v57, %v475_v56 }
 0x112   : > { %2447 = vtanh.f32 %v481_v58 }
 0x11f   : > { %v2448_v59 = vpop.eup %2447 }
 0x120   : > { %2265 = vmatpush3.msra.mxu1 %v2448_v59 }
 0x121   : > { %2267 = vmatmul.mubr.msk.f32.vlgmr.msra.gmra.mxu1 %vm376_vm0, %v2610_v1 }
 0x1e1   : > { %v557_v61 = vpop.f32.mrf.mxu1 }
 0x1e2   : > { %v558_v62 = vadd.f32 %v557_v61, %v486_v60 }
 0x1e3   : > { %v2268_v63 = vpop.f32.mrf.mxu1 }
 0x1e4   : > { %v561_v0 = vrot.slane %v558_v62, 4 }
 0x1e6   : > { %v562_v10 = vadd.f32 %v561_v0, %v558_v62  ;;  %v693_v0 = vpop.permute.xlu1 %692 }
 0x1e8   : > { %v563_v11 = vrot.slane %v562_v10, 2 }
 0x1ea   : > { %v564_v12 = vadd.f32 %v563_v11, %v562_v10  ;;  %v699_v11 = vpop.permute.xlu0 %698 }
 0x1ec   : > { %v565_v13 = vrot.slane %v564_v12, 1 }
 0x1ee   : > { %v566_v14 = vadd.f32 %v565_v13, %v564_v12 }
 0x1f0   : > { %v567_v15 = vmul.f32 0.125, %v566_v14 }
 0x1f2   : > { %v568_v16 = vsub.f32 %v558_v62, %v567_v15 }
 0x1f4   : > { %v569_v17 = vmul.f32 %v568_v16, %v568_v16 }
 0x1f6   : > { %v570_v18 = vrot.slane %v569_v17, 4 }
 0x1f8   : > { %v571_v29 = vadd.f32 %v570_v18, %v569_v17 }
 0x1fa   : > { %v572_v30 = vrot.slane %v571_v29, 2 }
 0x1fc   : > { %v573_v31 = vadd.f32 %v572_v30, %v571_v29 }
 0x1fe   : > { %v574_v32 = vrot.slane %v573_v31, 1 }
 0x200   : > { %v575_v33 = vadd.f32 %v574_v32, %v573_v31 }
 0x202   : > { %v576_v1 = vmul.f32 0.125, %v575_v33 }
 0x204   : > { %v577_v34 = vadd.f32 1e-05, %v576_v1 }
 0x206   : > { %2449 = vrsqrt.f32 %v577_v34 }
 0x213   : > { %v2450_v35 = vpop.eup %2449 }
 0x214   : > { %v579_v36 = vmul.f32 %v2450_v35, %v568_v16 }
 0x216   : > { %v585_v38 = vmul.f32 %v583_v37, %v579_v36 }
 0x218   : > { %v591_v40 = vadd.f32 %v589_v39, %v585_v38 }
 0x21a   : > { %2451 = vtanh.f32 %v591_v40 }
 0x227   : > { %v2452_v41 = vpop.eup %2451 }
 0x228   : > { %2270 = vmatpush3.msra.mxu0 %v2452_v41 }
 0x229   : > { %2272 = vmatmul.mubr.msk.f32.vlgmr.msra.gmra.mxu0 %vm376_vm0, %v2615_v2 }
 0x2e9   : > { %v667_v43 = vpop.f32.mrf.mxu0 }
 0x2ea   : > { %v668_v44 = vadd.f32 %v667_v43, %v596_v42 }
 0x2eb   : > { %v2273_v45 = vpop.f32.mrf.mxu0 }
 0x2ec   : > { %v671_v46 = vrot.slane %v668_v44, 4 }
 0x2ee   : > { %v672_v47 = vadd.f32 %v671_v46, %v668_v44 }
 0x2f0   : > { %v673_v48 = vrot.slane %v672_v47, 2 }
 0x2f2   : > { %v674_v49 = vadd.f32 %v673_v48, %v672_v47 }
 0x2f4   : > { %v675_v50 = vrot.slane %v674_v49, 1 }
 0x2f6   : > { %v676_v51 = vadd.f32 %v675_v50, %v674_v49 }
 0x2f8   : > { %v677_v52 = vmul.f32 0.125, %v676_v51 }
 0x2fa   : > { %v678_v53 = vsub.f32 %v668_v44, %v677_v52 }
 0x2fc   : > { %v679_v54 = vmul.f32 %v678_v53, %v678_v53 }
 0x2fe   : > { %v680_v55 = vrot.slane %v679_v54, 4 }
 0x300   : > { %v681_v56 = vadd.f32 %v680_v55, %v679_v54 }
 0x302   : > { %v682_v57 = vrot.slane %v681_v56, 2 }
 0x304   : > { %v683_v58 = vadd.f32 %v682_v57, %v681_v56 }
 0x306   : > { %v684_v59 = vrot.slane %v683_v58, 1 }
 0x308   : > { %v685_v60 = vadd.f32 %v684_v59, %v683_v58 }
 0x30a   : > { %v686_v2 = vmul.f32 0.125, %v685_v60 }
 0x30c   : > { %v687_v61 = vadd.f32 1e-05, %v686_v2 }
 0x30e   : > { %2453 = vrsqrt.f32 %v687_v61 }
 0x31b   : > { %v2454_v62 = vpop.eup %2453 }
 0x31c   : > { %v689_v63 = vmul.f32 %v2454_v62, %v678_v53 }
 0x31e   : > { %v695_v10 = vmul.f32 %v693_v0, %v689_v63 }
 0x320   : > { %v701_v12 = vadd.f32 %v699_v11, %v695_v10 }
 0x322   : > { %2455 = vtanh.f32 %v701_v12 }
 0x32f   : > { %v2456_v13 = vpop.eup %2455 }
 0x330   : > { %703 = vst [vmem:[#allocation2] sm:$0xff] %v2456_v13  ;;  %v704_v14 = vmul.f32 2.0, %v2456_v13 }
 0x332   : > { %705 = vst [vmem:[#allocation3] sm:$0xff] %v704_v14 }
 0x333 PF: > { %v751_v15 = vlaneseq  ;;  %v2532_v16 = vmov 0.0   ;;  %vm2533_vm2 = vmmov 0   ;;  %v2756_v18 = vld [vmem:[%s3270_s3] ss:$0 sm:$0xff]  ;;  %v2534_v35 = vmov 1.0|1.0  }
 0x334   : > { %710 = vst [vmem:[#allocation4 + $0x8] sm:$0xff] %v2532_v16  ;;  %711 = vst [vmem:[#allocation4] sm:$0xff] %v2532_v16  ;;  %2274 = vmatprep.subr.bf16.mxu0 %v2532_v16  ;;  %2294 = vmatprep.subr.bf16.mxu1 %v2532_v16  ;;  %v2761_v29 = vld [vmem:[%s3271_s4] ss:$0 sm:$0xff]  ;;  %v2535_v48 = vmov 0   ;;  %v718_v50 = vld [vmem:[%s3268_s1 + $0x8] sm:$0xff] }
 0x335   : > { %712 = vst [vmem:[#allocation5 + $0x8] sm:$0xff] %v2532_v16  ;;  %713 = vst [vmem:[#allocation5] sm:$0xff] %v2532_v16  ;;  %v2747_v17 = vshrl.u32 %v751_v15, 7  ;;  %2290 = vmatprep.mubr.msk.bf16.mxu0 %vm2533_vm2, %v2532_v16  ;;  %2310 = vmatprep.mubr.msk.bf16.mxu1 %vm2533_vm2, %v2532_v16  ;;  %v717_v49 = vld [vmem:[%s3268_s1] sm:$0xff]  ;;  %v719_v51 = vld [vmem:[%s3268_s1 + $0x10] sm:$0xff]  ;;  %p1452_p5 = scmp.lt.s32.totalorder %s2519_s24, 3 }
 0x336   : > { %2457 = vset.pattern.permute.xlu0 %v2535_v48  ;;  %2458 = vset.pattern.permute.xlu1 %v2535_v48  ;;  %v723_v52 = vld [vmem:[%s3268_s1 + $0x30] sm:$0xff]  ;;  %v724_v53 = vld [vmem:[%s3268_s1 + $0x38] sm:$0xff]  ;;  %v725_v54 = vld [vmem:[%s3268_s1 + $0x40] sm:$0xff]  ;;  %p2154_p6 = scmp.ge.s32.totalorder %s2519_s24, 3 }
 0x337   : > { %v768_v30 = vadd.s32 112, %v2747_v17  ;;  %v769_v31 = vadd.s32 120, %v2747_v17  ;;  %v766_v32 = vadd.s32 96, %v2747_v17  ;;  %v767_v33 = vadd.s32 104, %v2747_v17  ;;  %1329 = vperm.xlu0 %2457, %v2683_v19   ;;  %1361 = vperm.xlu1 %2458, %v2693_v21   ;;  %v720_v19 = vld [vmem:[%s3268_s1 + $0x18] sm:$0xff]  ;;  %v721_v21 = vld [vmem:[%s3268_s1 + $0x20] sm:$0xff] }
 0x338   : > { %v764_v1 = vadd.s32 80, %v2747_v17  ;;  %v765_v34 = vadd.s32 88, %v2747_v17  ;;  %v762_v36 = vadd.s32 64, %v2747_v17  ;;  %v763_v37 = vadd.s32 72, %v2747_v17  ;;  %v726_v55 = vld [vmem:[%s3268_s1 + $0x48] sm:$0xff]  ;;  %v727_v56 = vld [vmem:[%s3268_s1 + $0x50] sm:$0xff] }
 0x339   : > { %vm996_vm3 = vcmp.eq.s32.totalorder %v2756_v18, %v768_v30  ;;  %vm997_vm4 = vcmp.eq.s32.totalorder %v2756_v18, %v769_v31  ;;  %vm1056_vm5 = vcmp.eq.s32.totalorder %v2761_v29, %v768_v30  ;;  %vm1057_vm6 = vcmp.eq.s32.totalorder %v2761_v29, %v769_v31  ;;  %v2837_v45 = vld [vmem:[#allocation3] sm:$0xff]  ;;  %v2839_v46 = vld [vmem:[#allocation3 + $0x8] sm:$0xff]  ;;  %v728_v57 = vld [vmem:[%s3268_s1 + $0x58] sm:$0xff] }
 0x33a   : > { %vm2118_vm7 = vmpackc.low %vm997_vm4, %vm996_vm3  ;;  %vm994_vm8 = vcmp.eq.s32.totalorder %v2756_v18, %v766_v32  ;;  %vm995_vm9 = vcmp.eq.s32.totalorder %v2756_v18, %v767_v33  ;;  %vm1054_vm10 = vcmp.eq.s32.totalorder %v2761_v29, %v766_v32  ;;  %vm1055_vm11 = vcmp.eq.s32.totalorder %v2761_v29, %v767_v33  ;;  %3288 = vst [vmem:[#allocation18_spill] sm:$0xff] %v2837_v45  ;;  %v729_v58 = vld [vmem:[%s3268_s1 + $0x60] sm:$0xff]  ;;  %v730_v59 = vld [vmem:[%s3268_s1 + $0x68] sm:$0xff] }
 0x33b   : > { %2275 = vmatpush3.bf16.msk.msra.mxu0 %vm2118_vm7, %v2534_v35  ;;  %vm2134_vm12 = vmpackc.low %vm1057_vm6, %vm1056_vm5  ;;  %vm992_vm15 = vcmp.eq.s32.totalorder %v2756_v18, %v764_v1  ;;  %vm993_vm0 = vcmp.eq.s32.totalorder %v2756_v18, %v765_v34  ;;  %vm1052_vm1 = vcmp.eq.s32.totalorder %v2761_v29, %v764_v1  ;;  %vm1053_vm3 = vcmp.eq.s32.totalorder %v2761_v29, %v765_v34  ;;  %v732_v60 = vld [vmem:[%s3268_s1 + $0x78] sm:$0xff]  ;;  %v733_v2 = vld [vmem:[%s3269_s2] sm:$0xff] }
 0x33c   : > { %2295 = vmatpush3.bf16.msk.msra.mxu1 %vm2134_vm12, %v2534_v35  ;;  %2276 = vmatprep.subr.bf16.mxu0 %v2532_v16  ;;  %vm2120_vm13 = vmpackc.low %vm995_vm9, %vm994_vm8  ;;  %vm990_vm6 = vcmp.eq.s32.totalorder %v2756_v18, %v762_v36  ;;  %vm991_vm7 = vcmp.eq.s32.totalorder %v2756_v18, %v763_v37  ;;  %v760_v38 = vadd.s32 48, %v2747_v17  ;;  %v761_v39 = vadd.s32 56, %v2747_v17  ;;  %3289 = vst [vmem:[#allocation19_spill] sm:$0xff] %v2839_v46  ;;  %v734_v61 = vld [vmem:[%s3269_s2 + $0x8] sm:$0xff]  ;;  %v735_v62 = vld [vmem:[%s3269_s2 + $0x10] sm:$0xff] }
 0x33d   : > { %2296 = vmatprep.subr.bf16.mxu1 %v2532_v16  ;;  %vm2136_vm14 = vmpackc.low %vm1055_vm11, %vm1054_vm10  ;;  %vm1050_vm8 = vcmp.eq.s32.totalorder %v2761_v29, %v762_v36  ;;  %vm1051_vm9 = vcmp.eq.s32.totalorder %v2761_v29, %v763_v37  ;;  %v758_v40 = vadd.s32 32, %v2747_v17  ;;  %v759_v41 = vadd.s32 40, %v2747_v17  ;;  %1355 = vperm.xlu0 %2457, %v2688_v20   ;;  %v722_v20 = vld [vmem:[%s3268_s1 + $0x28] sm:$0xff]  ;;  %v736_v63 = vld [vmem:[%s3269_s2 + $0x18] sm:$0xff] }
 0x33e   : > { %vm2122_vm4 = vmpackc.low %vm993_vm0, %vm992_vm15  ;;  %vm988_vm12 = vcmp.eq.s32.totalorder %v2756_v18, %v760_v38  ;;  %vm1049_vm15 = vcmp.eq.s32.totalorder %v2761_v29, %v761_v39  ;;  %v756_v42 = vadd.s32 16, %v2747_v17  ;;  %v757_v43 = vadd.s32 24, %v2747_v17  ;;  %771 = vperm.xlu1 %2458, %v717_v49   ;;  %v737_v0 = vld [vmem:[%s3269_s2 + $0x20] sm:$0xff]  ;;  %v738_v10 = vld [vmem:[%s3269_s2 + $0x28] sm:$0xff] }
 0x33f   : > { %2277 = vmatpush3.bf16.msk.msra.mxu0 %vm2120_vm13, %v2534_v35  ;;  %vm2138_vm5 = vmpackc.low %vm1053_vm3, %vm1052_vm1  ;;  %vm989_vm13 = vcmp.eq.s32.totalorder %v2756_v18, %v761_v39  ;;  %vm986_vm3 = vcmp.eq.s32.totalorder %v2756_v18, %v758_v40  ;;  %v755_v44 = vadd.s32 8, %v2747_v17  ;;  %v716_v47 = vpack.c.bf16 %v2839_v46, %v2837_v45  ;;  %v739_v11 = vld [vmem:[%s3269_s2 + $0x30] sm:$0xff]  ;;  %v740_v12 = vld [vmem:[%s3269_s2 + $0x38] sm:$0xff] }
 0x340   : > { %2297 = vmatpush3.bf16.msk.msra.mxu1 %vm2136_vm14, %v2534_v35  ;;  %2278 = vmatprep.subr.bf16.mxu0 %v2532_v16  ;;  %vm2124_vm10 = vmpackc.low %vm991_vm7, %vm990_vm6  ;;  %vm1048_vm14 = vcmp.eq.s32.totalorder %v2761_v29, %v760_v38  ;;  %vm1047_vm6 = vcmp.eq.s32.totalorder %v2761_v29, %v759_v41  ;;  %v741_v13 = vld [vmem:[%s3269_s2 + $0x40] sm:$0xff]  ;;  %v742_v14 = vld [vmem:[%s3269_s2 + $0x48] sm:$0xff] }
 0x341   : > { %2298 = vmatprep.subr.bf16.mxu1 %v2532_v16  ;;  %vm2140_vm11 = vmpackc.low %vm1051_vm9, %vm1050_vm8  ;;  %vm984_vm9 = vcmp.eq.s32.totalorder %v2756_v18, %v756_v42  ;;  %774 = vperm.xlu0 %2457, %v718_v50   ;;  %v745_v30 = vld [vmem:[%s3269_s2 + $0x60] sm:$0xff]  ;;  %v746_v31 = vld [vmem:[%s3269_s2 + $0x68] sm:$0xff] }
 0x342   : > { %vm2126_vm0 = vmpackc.low %vm989_vm13, %vm988_vm12  ;;  %vm1045_vm12 = vcmp.eq.s32.totalorder %v2761_v29, %v757_v43  ;;  %777 = vperm.xlu1 %2458, %v719_v51   ;;  %v747_v32 = vld [vmem:[%s3269_s2 + $0x70] sm:$0xff]  ;;  %v748_v33 = vld [vmem:[%s3269_s2 + $0x78] sm:$0xff] }
 0x343   : > { %2279 = vmatpush3.bf16.msk.msra.mxu0 %vm2122_vm4, %v2534_v35  ;;  %vm2142_vm1 = vmpackc.low %vm1049_vm15, %vm1048_vm14  ;;  %vm987_vm4 = vcmp.eq.s32.totalorder %v2756_v18, %v759_v41  ;;  %vm982_vm15 = vcmp.eq.s32.totalorder %v2756_v18, %v2747_v17 }
 0x344   : > { %2299 = vmatpush3.bf16.msk.msra.mxu1 %vm2138_vm5, %v2534_v35  ;;  %2280 = vmatprep.subr.bf16.mxu0 %v2532_v16  ;;  %vm1046_vm5 = vcmp.eq.s32.totalorder %v2761_v29, %v758_v40  ;;  %vm2128_vm7 = vmpackc.low %vm987_vm4, %vm986_vm3  ;;  %vm1043_vm3 = vcmp.eq.s32.totalorder %v2761_v29, %v755_v44 }
 0x345   : > { %2300 = vmatprep.subr.bf16.mxu1 %v2532_v16  ;;  %vm2144_vm8 = vmpackc.low %vm1047_vm6, %vm1046_vm5  ;;  %780 = vperm.xlu0 %2457, %v720_v19   ;;  %vm3275_vm6 = vcmask 130048  }
 0x346   : > { %783 = vperm.xlu1 %2458, %v721_v21  }
 0x347   : > { %2281 = vmatpush3.bf16.msk.msra.mxu0 %vm2124_vm10, %v2534_v35  ;;  %vm985_vm10 = vcmp.eq.s32.totalorder %v2756_v18, %v757_v43  ;;  %v2978_v43 = vand.u32 127, %v751_v15 }
 0x348   : > { %2301 = vmatpush3.bf16.msk.msra.mxu1 %vm2140_vm11, %v2534_v35  ;;  %2282 = vmatprep.subr.bf16.mxu0 %v2532_v16  ;;  %vm1044_vm11 = vcmp.eq.s32.totalorder %v2761_v29, %v756_v42  ;;  %vm2130_vm13 = vmpackc.low %vm985_vm10, %vm984_vm9 }
 0x349   : > { %2302 = vmatprep.subr.bf16.mxu1 %v2532_v16  ;;  %vm2146_vm14 = vmpackc.low %vm1045_vm12, %vm1044_vm11  ;;  %786 = vperm.xlu0 %2457, %v722_v20  }
 0x34a   : > { %789 = vperm.xlu1 %2458, %v723_v52  }
 0x34b   : > { %2283 = vmatpush3.bf16.msk.msra.mxu0 %vm2126_vm0, %v2534_v35  ;;  %vm983_vm0 = vcmp.eq.s32.totalorder %v2756_v18, %v755_v44  ;;  %v743_v18 = vld [vmem:[%s3269_s2 + $0x50] sm:$0xff] }
 0x34c   : > { %2303 = vmatpush3.bf16.msk.msra.mxu1 %vm2142_vm1, %v2534_v35  ;;  %2284 = vmatprep.subr.bf16.mxu0 %v2532_v16  ;;  %vm1042_vm1 = vcmp.eq.s32.totalorder %v2761_v29, %v2747_v17  ;;  %vm2132_vm4 = vmpackc.low %vm983_vm0, %vm982_vm15  ;;  %v744_v29 = vld [vmem:[%s3269_s2 + $0x58] sm:$0xff] }
 0x34d   : > { %2304 = vmatprep.subr.bf16.mxu1 %v2532_v16  ;;  %vm2148_vm5 = vmpackc.low %vm1043_vm3, %vm1042_vm1  ;;  %792 = vperm.xlu0 %2457, %v724_v53   ;;  %vm3278_vm3 = vcmask 64512  }
 0x34e   : > { %795 = vperm.xlu1 %2458, %v725_v54  }
 0x34f   : > { %2285 = vmatpush3.bf16.msk.msra.mxu0 %vm2128_vm7, %v2534_v35 }
 0x350   : > { %2305 = vmatpush3.bf16.msk.msra.mxu1 %vm2144_vm8, %v2534_v35  ;;  %2286 = vmatprep.subr.bf16.mxu0 %v2532_v16 }
 0x351   : > { %2306 = vmatprep.subr.bf16.mxu1 %v2532_v16  ;;  %1368 = vperm.xlu0 %2457, %v2728_v28   ;;  %v731_v28 = vld [vmem:[%s3268_s1 + $0x70] sm:$0xff] }
 0x352   : > { %798 = vperm.xlu1 %2458, %v726_v55  }
 0x353   : > { %2287 = vmatpush3.bf16.msk.msra.mxu0 %vm2130_vm13, %v2534_v35 }
 0x354   : > { %2307 = vmatpush3.bf16.msk.msra.mxu1 %vm2146_vm14, %v2534_v35  ;;  %2288 = vmatprep.subr.bf16.mxu0 %v2532_v16 }
 0x355   : > { %2308 = vmatprep.subr.bf16.mxu1 %v2532_v16  ;;  %801 = vperm.xlu0 %2457, %v727_v56  }
 0x356   : > { %804 = vperm.xlu1 %2458, %v728_v57  }
 0x357   : > { %2289 = vmatpush3.bf16.msk.msra.mxu0 %vm2132_vm4, %v2534_v35 }
 0x358   : > { %2309 = vmatpush3.bf16.msk.msra.mxu1 %vm2148_vm5, %v2534_v35  ;;  %2314 = vmatprep.subr.mxu0 %v2532_v16 }
 0x359   : > { %2321 = vmatprep.subr.mxu1 %v2532_v16  ;;  %807 = vperm.xlu0 %2457, %v729_v58  }
 0x35a   : > { %2291 = vmatmul.mubr.bf16.vlgmr.msra.gmra.mxu0 %v716_v47  ;;  %810 = vperm.xlu1 %2458, %v730_v59  }
 0x35b   : > { %2311 = vmatmul.mubr.bf16.vlgmr.msra.gmra.mxu1 %v716_v47  ;;  %2318 = vmatprep.mubr.msk.f32.mxu0 %vm2533_vm2, %v2532_v16 }
 0x35c   : > { %2325 = vmatprep.mubr.msk.f32.mxu1 %vm2533_vm2, %v2532_v16 }
 0x35d   : > { %813 = vperm.xlu0 %2457, %v731_v28  }
 0x35e   : > { %816 = vperm.xlu1 %2458, %v732_v60  }
 0x361   : > { %875 = vperm.xlu0 %2457, %v733_v2  }
 0x362   : > { %878 = vperm.xlu1 %2458, %v734_v61  }
 0x365   : > { %881 = vperm.xlu0 %2457, %v735_v62  }
 0x366   : > { %884 = vperm.xlu1 %2458, %v736_v63  }
 0x369   : > { %887 = vperm.xlu0 %2457, %v737_v0  }
 0x36a   : > { %890 = vperm.xlu1 %2458, %v738_v10  }
 0x36d   : > { %893 = vperm.xlu0 %2457, %v739_v11  }
 0x36e   : > { %896 = vperm.xlu1 %2458, %v740_v12  }
 0x371   : > { %899 = vperm.xlu0 %2457, %v741_v13  }
 0x372   : > { %902 = vperm.xlu1 %2458, %v742_v14  }
 0x375   : > { %905 = vperm.xlu0 %2457, %v743_v18  }
 0x376   : > { %908 = vperm.xlu1 %2458, %v744_v29  }
 0x379   : > { %911 = vperm.xlu0 %2457, %v745_v30  }
 0x37a   : > { %914 = vperm.xlu1 %2458, %v746_v31  }
 0x37d   : > { %917 = vperm.xlu0 %2457, %v747_v32  }
 0x37e   : > { %920 = vperm.xlu1 %2458, %v748_v33  }
 0x3b2   : > { %v2965_v40 = vpop.permute.xlu0 %1329  ;;  %v2969_v42 = vpop.permute.xlu1 %1361 }
 0x3b8   : > { %v2980_v44 = vpop.permute.xlu0 %1355 }
 0x3b9   : > { %v2984_v47 = vpop.permute.xlu1 %771 }
 0x3bc   : > { %v2988_v48 = vpop.permute.xlu0 %774 }
 0x41a   : > { %v2954_v1 = vpop.f32.mrf.mxu0 }
 0x41b   : > { %v2956_v34 = vpop.f32.mrf.mxu1 }
 0x41c   : > { %v2292_v35 = vpop.f32.mrf.mxu0 }
 0x41d   : > { %v2312_v36 = vpop.f32.mrf.mxu1 }
 0x41e   : > { %v2958_v37 = vpop.f32.mrf.mxu0 }
 0x41f   : > { %v2960_v38 = vpop.f32.mrf.mxu1  ;;  %2322 = vmatpush3.msra.mxu1 %v2958_v37 }
 0x420   : > { %2315 = vmatpush3.msra.mxu0 %v2960_v38  ;;  %v2293_v39 = vpop.f32.mrf.mxu0  ;;  %2323 = vmatprep.subr.mxu1 %v2532_v16 }
 0x421   : > { %v2313_v41 = vpop.f32.mrf.mxu1  ;;  %2316 = vmatprep.subr.mxu0 %v2532_v16  ;;  %2324 = vmatpush3.msra.mxu1 %v2954_v1 }
 0x422   : > { %2317 = vmatpush3.msra.mxu0 %v2956_v34  ;;  %2326 = vmatmul.mubr.msk.f32.vlgmr.msra.gmra.mxu1 %vm3275_vm6, %v2621_v3  ;;  %v2992_v3 = vpop.permute.xlu1 %777 }
 0x423   : > { %2319 = vmatmul.mubr.msk.f32.vlgmr.msra.gmra.mxu0 %vm3275_vm6, %v2626_v4  ;;  %2328 = vmatprep.subr.mxu0 %v2532_v16  ;;  %v2996_v4 = vpop.permute.xlu0 %780 }
 0x424   : > { %2330 = vmatprep.mubr.msk.f32.mxu0 %vm2533_vm2, %v2532_v16 }
 0x426   : > { %v3050_v57 = vpop.permute.xlu1 %783 }
 0x427   : > { %v3000_v15 = vpop.permute.xlu0 %786 }
 0x42a   : > { %v3056_v59 = vpop.permute.xlu1 %789 }
 0x42b   : > { %v3004_v16 = vpop.permute.xlu0 %792 }
 0x42e   : > { %v3058_v28 = vpop.permute.xlu1 %795 }
 0x42f   : > { %v3008_v49 = vpop.permute.xlu0 %1368 }
 0x432   : > { %v3060_v60 = vpop.permute.xlu1 %798 }
 0x433   : > { %v3010_v50 = vpop.permute.xlu0 %801 }
 0x434   : > { %vm828_vm12 = vcmp.eq.s32.totalorder %v3010_v50, %v2978_v43 }
 0x436   : > { %v3062_v2 = vpop.permute.xlu1 %804 }
 0x437   : > { %v3014_v51 = vpop.permute.xlu0 %807  ;;  %vm829_vm9 = vcmp.eq.s32.totalorder %v3062_v2, %v2978_v43 }
 0x438   : > { %vm830_vm13 = vcmp.eq.s32.totalorder %v3014_v51, %v2978_v43 }
 0x43a   : > { %v3064_v61 = vpop.permute.xlu1 %810 }
 0x43b   : > { %v3018_v19 = vpop.permute.xlu0 %813  ;;  %vm831_vm1 = vcmp.eq.s32.totalorder %v3064_v61, %v2978_v43 }
 0x43c   : > { %vm832_vm14 = vcmp.eq.s32.totalorder %v3018_v19, %v2978_v43 }
 0x43e   : > { %v3066_v62 = vpop.permute.xlu1 %816 }
 0x43f   : > { %v3022_v21 = vpop.permute.xlu0 %875  ;;  %vm833_vm10 = vcmp.eq.s32.totalorder %v3066_v62, %v2978_v43 }
 0x442   : > { %v3068_v63 = vpop.permute.xlu1 %878 }
 0x443   : > { %v3026_v20 = vpop.permute.xlu0 %881 }
 0x446   : > { %v3070_v0 = vpop.permute.xlu1 %884 }
 0x447   : > { %v3030_v52 = vpop.permute.xlu0 %887 }
 0x44a   : > { %v3072_v10 = vpop.permute.xlu1 %890 }
 0x44b   : > { %v3034_v53 = vpop.permute.xlu0 %893 }
 0x44e   : > { %v3074_v11 = vpop.permute.xlu1 %896 }
 0x44f   : > { %v3038_v54 = vpop.permute.xlu0 %899 }
 0x452   : > { %v3076_v12 = vpop.permute.xlu1 %902 }
 0x453   : > { %v3042_v55 = vpop.permute.xlu0 %905  ;;  %vm931_vm4 = vcmp.eq.s32.totalorder %v3076_v12, %v2978_v43 }
 0x454   : > { %vm932_vm5 = vcmp.eq.s32.totalorder %v3042_v55, %v2978_v43 }
 0x456   : > { %v3078_v13 = vpop.permute.xlu1 %908 }
 0x457   : > { %v3046_v56 = vpop.permute.xlu0 %911  ;;  %vm933_vm2 = vcmp.eq.s32.totalorder %v3078_v13, %v2978_v43 }
 0x458   : > { %vm934_vm6 = vcmp.eq.s32.totalorder %v3046_v56, %v2978_v43 }
 0x45a   : > { %v3080_v14 = vpop.permute.xlu1 %914 }
 0x45b   : > { %v3052_v58 = vpop.permute.xlu0 %917  ;;  %vm935_vm0 = vcmp.eq.s32.totalorder %v3080_v14, %v2978_v43 }
 0x45c   : > { %vm936_vm15 = vcmp.eq.s32.totalorder %v3052_v58, %v2978_v43 }
 0x45e   : > { %v921_v18 = vpop.permute.xlu1 %920 }
 0x45f   : > { %vm937_vm8 = vcmp.eq.s32.totalorder %v921_v18, %v2978_v43 }
 0x4e2   : > { %v1323_v29 = vpop.f32.mrf.mxu1 }
 0x4e3   : > { %v1250_v30 = vpop.f32.mrf.mxu0 }
 0x4e4   : > { %v1324_v31 = vadd.f32 %v1323_v29, %v1250_v30  ;;  %v2327_v32 = vpop.f32.mrf.mxu1 }
 0x4e5   : > { %v2320_v33 = vpop.f32.mrf.mxu0 }
 0x4e6   : > { %v1332_v35 = vadd.f32 %v2965_v40, %v1324_v31 }
 0x4e8   : > { %v1333_v36 = vrot.slane %v1332_v35, 4 }
 0x4ea   : > { %v1334_v39 = vadd.f32 %v1333_v36, %v1332_v35 }
 0x4ec   : > { %v1335_v41 = vrot.slane %v1334_v39, 2 }
 0x4ee   : > { %v1336_v9 = vadd.f32 %v1335_v41, %v1334_v39 }
 0x4f0   : > { %v1337_v27 = vrot.slane %v1336_v9, 1 }
 0x4f2   : > { %v1338_v26 = vadd.f32 %v1337_v27, %v1336_v9 }
 0x4f4   : > { %v1340_v25 = vmul.f32 0.125, %v1338_v26 }
 0x4f6   : > { %v1341_v23 = vsub.f32 %v1332_v35, %v1340_v25 }
 0x4f8   : > { %v1342_v24 = vmul.f32 %v1341_v23, %v1341_v23 }
 0x4fa   : > { %v1343_v8 = vrot.slane %v1342_v24, 4 }
 0x4fc   : > { %v1344_v45 = vadd.f32 %v1343_v8, %v1342_v24 }
 0x4fe   : > { %v1345_v22 = vrot.slane %v1344_v45, 2 }
 0x500   : > { %v1346_v46 = vadd.f32 %v1345_v22, %v1344_v45 }
 0x502   : > { %v1347_v6 = vrot.slane %v1346_v46, 1 }
 0x504   : > { %v1348_v29 = vadd.f32 %v1347_v6, %v1346_v46 }
 0x506   : > { %v1349_v30 = vmul.f32 0.125, %v1348_v29 }
 0x508   : > { %v1350_v32 = vadd.f32 1e-05, %v1349_v30 }
 0x50a   : > { %2459 = vrsqrt.f32 %v1350_v32 }
 0x517   : > { %v2460_v40 = vpop.eup %2459 }
 0x518   : > { %v1352_v31 = vmul.f32 %v2460_v40, %v1341_v23 }
 0x51a   : > { %v1358_v33 = vmul.f32 %v2980_v44, %v1352_v31 }
 0x51c   : > { %v1364_v36 = vadd.f32 %v2969_v42, %v1358_v33 }
 0x51e   : > { %2461 = vtanh.f32 %v1364_v36 }
 0x52b   : > { %v2462_v9 = vpop.eup %2461 }
 0x52c   : > { %2329 = vmatpush3.msra.mxu0 %v2462_v9 }
 0x52d   : > { %2331 = vmatmul.mubr.msk.f32.vlgmr.msra.gmra.mxu0 %vm3278_vm3, %v2631_v5 }
 0x5ed   : > { %v1441_v8 = vpop.f32.mrf.mxu0 }
 0x5ee   : > { %v1442_v6 = vadd.f32 %v1441_v8, %v3008_v49 }
 0x5ef   : > { %v2332_v22 = vpop.f32.mrf.mxu0 }
 0x5f0   : > { %v2153_v24 = vmul.f32 -1.442695, %v1442_v6 }
 0x5f2   : > { %2463 = vpow2.f32 %v2153_v24 }
 0x5ff   : > { %v2464_v25 = vpop.eup %2463 }
 0x600   : > { %v1448_v23 = vadd.f32 1.0, %v2464_v25 }
 0x602   : > { %2465 = vrcp.f32 %v1448_v23 }
 0x60c   : > { %1455 = sbr.rel (%p2154_p6) target bundleno = 1786 (0x6fa), region = 60 }
 0x60f   : > { %v2466_v26 = vpop.eup %2465 }
 0x610   : > { %1451 = vst [vmem:[#allocation6] sm:$0x1] %v2466_v26 }
 0x611   : > { %vm2155_vm3 = vmpackc.low %vm833_vm10, %vm832_vm14  ;;  %v2536_v5 = vmov 0.0   ;;  %v2537_v27 = vmov 1.0|1.0   ;;  %v1460_v45 = vsub.s32 0, %v2747_v17  ;;  %v1457_v50 = vld [vmem:[#allocation4] sm:$0xff]  ;;  %v1511_v51 = vld [vmem:[#allocation5] sm:$0xff] }
 0x612   : > { %2333 = vmatprep.subr.bf16.mxu0 %v2536_v5  ;;  %2353 = vmatprep.subr.bf16.mxu1 %v2536_v5  ;;  %vm2171_vm11 = vmpackc.low %vm937_vm8, %vm936_vm15  ;;  %vm2538_vm8 = vmmov 0   ;;  %vm3294_vm15 = vcmp.eq.s32.totalorder %v3004_v16, %v2978_v43 }
 0x613   : > { %2334 = vmatpush3.bf16.msk.msra.mxu0 %vm2155_vm3, %v2537_v27  ;;  %2354 = vmatpush3.bf16.msk.msra.mxu1 %vm2171_vm11, %v2537_v27  ;;  %vm2157_vm7 = vmpackc.low %vm831_vm1, %vm830_vm13  ;;  %vm3291_vm13 = vcmp.eq.s32.totalorder %v3060_v60, %v2978_v43  ;;  %vm3295_vm1 = vcmp.eq.s32.totalorder %v3034_v53, %v2978_v43  ;;  %vm3296_vm3 = vcmp.eq.s32.totalorder %v3074_v11, %v2978_v43 }
 0x614   : > { %2335 = vmatprep.subr.bf16.mxu0 %v2536_v5  ;;  %2355 = vmatprep.subr.bf16.mxu1 %v2536_v5  ;;  %vm2173_vm10 = vmpackc.low %vm935_vm0, %vm934_vm6  ;;  %v1461_v46 = vrot.slane %v2466_v26, %v1460_v45 }
 0x615   : > { %2349 = vmatprep.mubr.msk.bf16.mxu0 %vm2538_vm8, %v2536_v5  ;;  %2369 = vmatprep.mubr.msk.bf16.mxu1 %vm2538_vm8, %v2536_v5  ;;  %vm2159_vm11 = vmpackc.low %vm829_vm9, %vm828_vm12  ;;  %vm3292_vm9 = vcmp.eq.s32.totalorder %v3038_v54, %v2978_v43 }
 0x616   : > { %vm2175_vm6 = vmpackc.low %vm933_vm2, %vm932_vm5  ;;  %vm3293_vm2 = vcmp.eq.s32.totalorder %v3056_v59, %v2978_v43  ;;  %v1462_v17 = vmul.f32 %v1461_v46, %v2956_v34  ;;  %v1463_v42 = vmul.f32 %v1461_v46, %v2960_v38  ;;  %v1512_v44 = vmul.f32 %v1461_v46, %v2954_v1  ;;  %v1510_v38 = vld [vmem:[#allocation5 + $0x8] sm:$0xff] }
 0x617   : > { %2336 = vmatpush3.bf16.msk.msra.mxu0 %vm2157_vm7, %v2537_v27  ;;  %2356 = vmatpush3.bf16.msk.msra.mxu1 %vm2173_vm10, %v2537_v27  ;;  %vm3290_vm7 = vcmp.eq.s32.totalorder %v3058_v28, %v2978_v43  ;;  %vm2177_vm12 = vmpackc.low %vm931_vm4, %vm3292_vm9  ;;  %vm3297_vm4 = vcmp.eq.s32.totalorder %v3050_v57, %v2978_v43  ;;  %vm3298_vm10 = vcmp.eq.s32.totalorder %v3000_v15, %v2978_v43 }
 0x618   : > { %2337 = vmatprep.subr.bf16.mxu0 %v2536_v5  ;;  %2357 = vmatprep.subr.bf16.mxu1 %v2536_v5  ;;  %vm2161_vm14 = vmpackc.low %vm3291_vm13, %vm3290_vm7  ;;  %vm3301_vm13 = vcmp.eq.s32.totalorder %v2992_v3, %v2978_v43  ;;  %v1513_v3 = vmul.f32 %v1461_v46, %v2958_v37  ;;  %v1464_v1 = vpack.c.bf16 %v1463_v42, %v1462_v17  ;;  %v1456_v37 = vld [vmem:[#allocation4 + $0x8] sm:$0xff] }
 0x619   : > { %vm2163_vm0 = vmpackc.low %vm3294_vm15, %vm3293_vm2  ;;  %vm3304_vm2 = vcmp.eq.s32.totalorder %v3070_v0, %v2978_v43 }
 0x61a   : > { %vm2179_vm5 = vmpackc.low %vm3296_vm3, %vm3295_vm1  ;;  %vm3306_vm1 = vcmp.eq.s32.totalorder %v2988_v48, %v2978_v43  ;;  %v1514_v34 = vpack.c.bf16 %v1513_v3, %v1512_v44 }
 0x61b   : > { %2338 = vmatpush3.bf16.msk.msra.mxu0 %vm2159_vm11, %v2537_v27  ;;  %2358 = vmatpush3.bf16.msk.msra.mxu1 %vm2175_vm6, %v2537_v27  ;;  %vm2165_vm8 = vmpackc.low %vm3298_vm10, %vm3297_vm4  ;;  %vm3299_vm11 = vcmp.eq.s32.totalorder %v3030_v52, %v2978_v43  ;;  %vm3300_vm6 = vcmp.eq.s32.totalorder %v3072_v10, %v2978_v43  ;;  %vm3308_vm4 = vcmp.eq.s32.totalorder %v3068_v63, %v2978_v43 }
 0x61c   : > { %2339 = vmatprep.subr.bf16.mxu0 %v2536_v5  ;;  %2359 = vmatprep.subr.bf16.mxu1 %v2536_v5  ;;  %vm2181_vm7 = vmpackc.low %vm3300_vm6, %vm3299_vm11 }
 0x61f   : > { %2340 = vmatpush3.bf16.msk.msra.mxu0 %vm2161_vm14, %v2537_v27  ;;  %2360 = vmatpush3.bf16.msk.msra.mxu1 %vm2177_vm12, %v2537_v27  ;;  %vm3302_vm14 = vcmp.eq.s32.totalorder %v2996_v4, %v2978_v43  ;;  %vm3303_vm12 = vcmp.eq.s32.totalorder %v3026_v20, %v2978_v43 }
 0x620   : > { %2341 = vmatprep.subr.bf16.mxu0 %v2536_v5  ;;  %2361 = vmatprep.subr.bf16.mxu1 %v2536_v5  ;;  %vm2167_vm9 = vmpackc.low %vm3302_vm14, %vm3301_vm13 }
 0x621   : > { %vm2183_vm15 = vmpackc.low %vm3304_vm2, %vm3303_vm12 }
 0x623   : > { %2342 = vmatpush3.bf16.msk.msra.mxu0 %vm2163_vm0, %v2537_v27  ;;  %2362 = vmatpush3.bf16.msk.msra.mxu1 %vm2179_vm5, %v2537_v27  ;;  %vm3305_vm0 = vcmp.eq.s32.totalorder %v2984_v47, %v2978_v43  ;;  %vm3307_vm5 = vcmp.eq.s32.totalorder %v3022_v21, %v2978_v43 }
 0x624   : > { %2343 = vmatprep.subr.bf16.mxu0 %v2536_v5  ;;  %2363 = vmatprep.subr.bf16.mxu1 %v2536_v5  ;;  %vm2169_vm3 = vmpackc.low %vm3306_vm1, %vm3305_vm0 }
 0x625   : > { %vm2185_vm10 = vmpackc.low %vm3308_vm4, %vm3307_vm5 }
 0x627   : > { %2344 = vmatpush3.bf16.msk.msra.mxu0 %vm2165_vm8, %v2537_v27  ;;  %2364 = vmatpush3.bf16.msk.msra.mxu1 %vm2181_vm7, %v2537_v27 }
 0x628   : > { %2345 = vmatprep.subr.bf16.mxu0 %v2536_v5  ;;  %2365 = vmatprep.subr.bf16.mxu1 %v2536_v5 }
 0x62b   : > { %2346 = vmatpush3.bf16.msk.msra.mxu0 %vm2167_vm9, %v2537_v27  ;;  %2366 = vmatpush3.bf16.msk.msra.mxu1 %vm2183_vm15, %v2537_v27 }
 0x62c   : > { %2347 = vmatprep.subr.bf16.mxu0 %v2536_v5  ;;  %2367 = vmatprep.subr.bf16.mxu1 %v2536_v5 }
 0x62f   : > { %2348 = vmatpush3.bf16.msk.msra.mxu0 %vm2169_vm3, %v2537_v27  ;;  %2368 = vmatpush3.bf16.msk.msra.mxu1 %vm2185_vm10, %v2537_v27 }
 0x632   : > { %2350 = vmatmul.mubr.bf16.vlgmr.msra.gmra.mxu0 %v1464_v1  ;;  %2370 = vmatmul.mubr.bf16.vlgmr.msra.gmra.mxu1 %v1514_v34 }
 0x6f2   : > { %v1499_v47 = vpop.f32.mrf.mxu0  ;;  %v1549_v48 = vpop.f32.mrf.mxu1 }
 0x6f3   : > { %v1506_v4 = vadd.f32 %v1499_v47, %v1456_v37  ;;  %v1556_v15 = vadd.f32 %v1549_v48, %v1510_v38 }
 0x6f4   : > { %v2351_v16 = vpop.f32.mrf.mxu0  ;;  %v2371_v49 = vpop.f32.mrf.mxu1 }
 0x6f5   : > { %1508 = vst [vmem:[#allocation4 + $0x8] sm:$0xff] %v1506_v4  ;;  %1558 = vst [vmem:[#allocation5 + $0x8] sm:$0xff] %v1556_v15 }
 0x6f6   : > { %v1502_v43 = vpop.f32.mrf.mxu0  ;;  %v1552_v19 = vpop.f32.mrf.mxu1 }
 0x6f7   : > { %v1507_v21 = vadd.f32 %v1502_v43, %v1457_v50  ;;  %v1557_v20 = vadd.f32 %v1552_v19, %v1511_v51 }
 0x6f8   : > { %v2352_v52 = vpop.f32.mrf.mxu0  ;;  %v2372_v53 = vpop.f32.mrf.mxu1 }
 0x6f9   : > { %1509 = vst [vmem:[#allocation4] sm:$0xff] %v1507_v21  ;;  %1559 = vst [vmem:[#allocation5] sm:$0xff] %v1557_v20 }
 0x6fa PF: > { %1563 = sbr.rel (!%p1452_p5) target bundleno = 2333 (0x91d), region = 64  ;;  %v2539_v56 = vmov (%p1452_p5), 0.0   ;;  %vm2540_vm8 = vmmov (%p1452_p5), 0   ;;  %vm3309_vm11 = vcmask (%p1452_p5), 130048   ;;  %v3310_v59 = vld [vmem:[#allocation9_spill] sm:$0xff] (%p1452_p5)  ;;  %v3312_v28 = vld [vmem:[#allocation19_spill] sm:$0xff] (%p1452_p5) }
 0x6fb   : > { %2373 = vmatprep.subr.mxu0 (%p1452_p5), %v2539_v56  ;;  %2380 = vmatprep.subr.mxu1 (%p1452_p5), %v2539_v56  ;;  %vm3311_vm6 = vmmov (%p1452_p5), %vm3309_vm11  ;;  %v2541_v60 = vmov (%p1452_p5), 0   ;;  %v3313_v2 = vld [vmem:[#allocation12_spill] sm:$0xff] (%p1452_p5)  ;;  %v3314_v61 = vld [vmem:[#allocation18_spill] sm:$0xff] (%p1452_p5)  ;;  %vm3323_vm13 = vcmask (%p1452_p5), 64512  }
 0x6fc   : > { %v1566_v57 = vld [vmem:[#allocation5 + $0x8] sm:$0xff] (%p1452_p5)  ;;  %v1564_v58 = vld [vmem:[#allocation4 + $0x8] sm:$0xff] (%p1452_p5)  ;;  %2377 = vmatprep.mubr.msk.f32.mxu0 (%p1452_p5), %vm2540_vm8, %v2539_v56  ;;  %2384 = vmatprep.mubr.msk.f32.mxu1 (%p1452_p5), %vm2540_vm8, %v2539_v56  ;;  %vm3316_vm7 = vmmov (%p1452_p5), %vm3311_vm6 }
 0x6fd   : > { %2467 = vset.pattern.permute.xlu0 (%p1452_p5), %v2541_v60  ;;  %2468 = vset.pattern.permute.xlu1 (%p1452_p5), %v2541_v60  ;;  %v3315_v62 = vld [vmem:[#allocation10_spill] sm:$0xff] (%p1452_p5)  ;;  %v3318_v63 = vld [vmem:[#allocation13_spill] sm:$0xff] (%p1452_p5)  ;;  %v3319_v0 = vld [vmem:[#allocation15_spill] sm:$0xff] (%p1452_p5) }
 0x6fe   : > { %1790 = vperm.xlu0 (%p1452_p5), %2467, %v3313_v2   ;;  %v3320_v10 = vld [vmem:[#allocation16_spill] sm:$0xff] (%p1452_p5)  ;;  %v3321_v11 = vld [vmem:[#allocation17_spill] sm:$0xff] (%p1452_p5)  ;;  %v3322_v47 = vld [vmem:[#allocation11_spill] sm:$0xff] (%p1452_p5) }
 0x700   : > { %v1567_v54 = vld [vmem:[#allocation5] sm:$0xff]  ;;  %v1565_v55 = vld [vmem:[#allocation4] sm:$0xff] }
 0x701   : > { %2374 = vmatpush3.msra.mxu0 %v1567_v54  ;;  %2381 = vmatpush3.msra.mxu1 %v1565_v55 }
 0x702   : > { %2375 = vmatprep.subr.mxu0 %v2539_v56  ;;  %2382 = vmatprep.subr.mxu1 %v2539_v56 }
 0x703   : > { %2376 = vmatpush3.msra.mxu0 %v1566_v57  ;;  %2383 = vmatpush3.msra.mxu1 %v1564_v58 }
 0x704   : > { %2378 = vmatmul.mubr.msk.f32.vlgmr.msra.gmra.mxu0 %vm3309_vm11, %v2641_v7  ;;  %2385 = vmatmul.mubr.msk.f32.vlgmr.msra.gmra.mxu1 %vm3311_vm6, %v3310_v59  ;;  %v3317_v7 = vld [vmem:[#allocation14_spill] sm:$0xff] }
 0x705   : > { %2387 = vmatprep.subr.mxu0 %v2539_v56  ;;  %2391 = vmatprep.mubr.msk.f32.mxu0 %vm2540_vm8, %v2539_v56 }
 0x706   : > { %2388 = vmatpush3.msra.mxu0 %v3312_v28  ;;  %1821 = vperm.xlu1 %2468, %v3317_v7  }
 0x707   : > { %2389 = vmatprep.subr.mxu0 %v2539_v56  ;;  %2394 = vmatprep.subr.mxu1 %v2539_v56 }
 0x708   : > { %2390 = vmatpush3.msra.mxu0 %v3314_v61  ;;  %2396 = vmatprep.mubr.msk.f32.mxu1 %vm2540_vm8, %v2539_v56 }
 0x709   : > { %2392 = vmatmul.mubr.msk.f32.vlgmr.msra.gmra.mxu0 %vm3316_vm7, %v3315_v62  ;;  %1815 = vperm.xlu0 %2467, %v3318_v63  }
 0x70a   : > { %1828 = vperm.xlu1 %2468, %v3319_v0  }
 0x70d   : > { %1925 = vperm.xlu0 %2467, %v3320_v10   ;;  %v1936_v10 = vld [vmem:[#allocation2] sm:$0xff] }
 0x70e   : > { %1931 = vperm.xlu1 %2468, %v3321_v11  }
 0x779   : > { %v1791_v29 = vpop.permute.xlu0 %1790 }
 0x781   : > { %v1822_v34 = vpop.permute.xlu1 %1821 }
 0x784   : > { %v1816_v3 = vpop.permute.xlu0 %1815 }
 0x785   : > { %v1829_v48 = vpop.permute.xlu1 %1828 }
 0x788   : > { %v1926_v62 = vpop.permute.xlu0 %1925 }
 0x789   : > { %v1932_v63 = vpop.permute.xlu1 %1931 }
 0x7c4   : > { %v1637_v12 = vpop.f32.mrf.mxu0  ;;  %v1710_v13 = vpop.f32.mrf.mxu1 }
 0x7c5   : > { %v1711_v35 = vadd.f32 %v1710_v13, %v1637_v12 }
 0x7c6   : > { %v2379_v14 = vpop.f32.mrf.mxu0  ;;  %v2386_v18 = vpop.f32.mrf.mxu1 }
 0x7c9   : > { %v1783_v39 = vpop.f32.mrf.mxu0 }
 0x7ca   : > { %v1787_v41 = vadd.f32 %v1783_v39, %v1711_v35 }
 0x7cb   : > { %v2393_v30 = vpop.f32.mrf.mxu0 }
 0x7cc   : > { %v1793_v32 = vadd.f32 %v1791_v29, %v1787_v41 }
 0x7ce   : > { %v1794_v40 = vrot.slane %v1793_v32, 4 }
 0x7d0   : > { %v1795_v31 = vadd.f32 %v1794_v40, %v1793_v32 }
 0x7d2   : > { %v1796_v33 = vrot.slane %v1795_v31, 2 }
 0x7d4   : > { %v1797_v36 = vadd.f32 %v1796_v33, %v1795_v31 }
 0x7d6   : > { %v1798_v9 = vrot.slane %v1797_v36, 1 }
 0x7d8   : > { %v1799_v8 = vadd.f32 %v1798_v9, %v1797_v36 }
 0x7da   : > { %v1800_v6 = vmul.f32 0.125, %v1799_v8 }
 0x7dc   : > { %v1801_v22 = vsub.f32 %v1793_v32, %v1800_v6 }
 0x7de   : > { %v1802_v24 = vmul.f32 %v1801_v22, %v1801_v22 }
 0x7e0   : > { %v1803_v25 = vrot.slane %v1802_v24, 4 }
 0x7e2   : > { %v1804_v23 = vadd.f32 %v1803_v25, %v1802_v24 }
 0x7e4   : > { %v1805_v26 = vrot.slane %v1804_v23, 2 }
 0x7e6   : > { %v1806_v5 = vadd.f32 %v1805_v26, %v1804_v23 }
 0x7e8   : > { %v1807_v27 = vrot.slane %v1806_v5, 1 }
 0x7ea   : > { %v1808_v45 = vadd.f32 %v1807_v27, %v1806_v5 }
 0x7ec   : > { %v1809_v46 = vmul.f32 0.125, %v1808_v45 }
 0x7ee   : > { %v1810_v17 = vadd.f32 1e-05, %v1809_v46 }
 0x7f0   : > { %2469 = vrsqrt.f32 %v1810_v17 }
 0x7fd   : > { %v2470_v42 = vpop.eup %2469 }
 0x7fe   : > { %v1812_v44 = vmul.f32 %v2470_v42, %v1801_v22 }
 0x800   : > { %v1818_v1 = vmul.f32 %v1816_v3, %v1812_v44 }
 0x802   : > { %v1824_v37 = vadd.f32 %v1822_v34, %v1818_v1 }
 0x804   : > { %2471 = vtanh.f32 %v1824_v37 }
 0x811   : > { %v2472_v38 = vpop.eup %2471 }
 0x812   : > { %2395 = vmatpush3.msra.mxu1 %v2472_v38 }
 0x813   : > { %2397 = vmatmul.mubr.msk.f32.vlgmr.msra.gmra.mxu1 %vm3323_vm13, %v3322_v47 }
 0x8d3   : > { %v1900_v4 = vpop.f32.mrf.mxu1 }
 0x8d4   : > { %v1901_v15 = vadd.f32 %v1900_v4, %v1829_v48 }
 0x8d5   : > { %v2398_v16 = vpop.f32.mrf.mxu1 }
 0x8d6   : > { %v1904_v49 = vrot.slane %v1901_v15, 4 }
 0x8d8   : > { %v1905_v50 = vadd.f32 %v1904_v49, %v1901_v15 }
 0x8da   : > { %v1906_v51 = vrot.slane %v1905_v50, 2 }
 0x8dc   : > { %v1907_v43 = vadd.f32 %v1906_v51, %v1905_v50 }
 0x8de   : > { %v1908_v19 = vrot.slane %v1907_v43, 1 }
 0x8e0   : > { %v1909_v21 = vadd.f32 %v1908_v19, %v1907_v43 }
 0x8e2   : > { %v1910_v20 = vmul.f32 0.125, %v1909_v21 }
 0x8e4   : > { %v1911_v52 = vsub.f32 %v1901_v15, %v1910_v20 }
 0x8e6   : > { %v1912_v53 = vmul.f32 %v1911_v52, %v1911_v52 }
 0x8e8   : > { %v1913_v54 = vrot.slane %v1912_v53, 4 }
 0x8ea   : > { %v1914_v55 = vadd.f32 %v1913_v54, %v1912_v53 }
 0x8ec   : > { %v1915_v56 = vrot.slane %v1914_v55, 2 }
 0x8ee   : > { %v1916_v57 = vadd.f32 %v1915_v56, %v1914_v55 }
 0x8f0   : > { %v1917_v58 = vrot.slane %v1916_v57, 1 }
 0x8f2   : > { %v1918_v59 = vadd.f32 %v1917_v58, %v1916_v57 }
 0x8f4   : > { %v1919_v28 = vmul.f32 0.125, %v1918_v59 }
 0x8f6   : > { %v1920_v60 = vadd.f32 1e-05, %v1919_v28 }
 0x8f8   : > { %2473 = vrsqrt.f32 %v1920_v60 }
 0x905   : > { %v2474_v2 = vpop.eup %2473 }
 0x906   : > { %v1922_v61 = vmul.f32 %v2474_v2, %v1911_v52 }
 0x908   : > { %v1928_v7 = vmul.f32 %v1926_v62, %v1922_v61 }
 0x90a   : > { %v1934_v0 = vadd.f32 %v1932_v63, %v1928_v7 }
 0x90c   : > { %2475 = vtanh.f32 %v1934_v0 }
 0x919   : > { %v2476_v11 = vpop.eup %2475 }
 0x91a   : > { %v1937_v12 = vadd.f32 %v2476_v11, %v1936_v10  ;;  %1939 = vst [vmem:[#allocation2] sm:$0xff] %v2476_v11 }
 0x91c   : > { %1938 = vst [vmem:[#allocation3] sm:$0xff] %v1937_v12 }
 0x91d PF: > { %p3243_p7 = scmp.eq.s32.totalorder %s2041_s27, 3  ;;  %s2542_s8 = smov [#allocation6]  }
 0x91e   : > { %s1949_s9 = sshll.u32 %s2542_s8, 4  ;;  %s1950_s9 = int_to_ptr.vmem [resolvable:$true] %s1949_s9 }
 0x91f   : > { %s2477_s10 = scalar_lea.vmem %s1950_s9, 16  ;;  %s2483_s11 = scalar_lea.vmem %s1950_s9, 32 }
 0x920   : > { %p2478_p8 = scmp.ne.s32.totalorder %s1950_s9, %s2477_s10  ;;  %p2484_p11 = scmp.lt.s32.totalorder %s1950_s9, %s1950_s9 }
 0x921   : > { %p2485_p12 = scmp.lt.s32.totalorder %s2483_s11, %s2477_s10 }
 0x922   : > { %p2479_p9 = pnand %p2478_p8, %p3243_p7 }
 0x923   : > { %p2486_p13 = por %p2485_p12, %p2484_p11 }
 0x924   : > { %p2480_p10 = pneg %p2479_p9 }
 0x926   : > { %p2487_p0 = pnand %p2486_p13, %p2480_p10 }
 0x928   : > { %2490 = shalt.err (!%p2487_p0)
}
 0x929   : > { %2400 = dma.vmem_to_hbm [thread:$0]  (%p3243_p7), %s1950_s9, 16, %s3274_s7, [#allocation7]  }
 0x92a   : > { %2514 = dma.done.wait (%p3243_p7), [#allocation7], 16  }
 0x92b   : > { %2516 = vsyncadd (%p3243_p7), [#allocation7], 4294967280 }
 0x92c PF: > { %s18_s26 = sadd.s32 1, %s2527_s26   ;;  %s3325_s24 = smov %s2523_s25 }
 0x92d   : > { %p15_p1 = scmp.ge.s32.totalorder %s18_s26, 6   ;;  %s3326_s25 = smov %s3328_s28 }
 0x92f   :  { %17 = sbr.rel (!%p15_p1) target bundleno = 2 (0x2), region = 101 }
 0x934   :  { %1962 = vsyncpa [#allocation7], 1 }
 0x935   :  { %1964 = vsyncpa [#allocation7 + $0x1], 1 }

</bundles_post_ra>
